<compile_context>
chip_gen: v6e
topology: v6e:2x2x1
jax: 0.10.0
libtpu: 0.0.40
codegen_flags: <defaults>
</compile_context>

<pallas_src>
import functools

import jax
import jax.numpy as jnp
from jax.experimental import pallas as pl
from jax.experimental.pallas import tpu as pltpu


def _rdb_fused_kernel(x_ref, w1_ref, b1_ref, w2_ref, b2_ref, w3_ref, b3_ref,
                      w4_ref, b4_ref, w5d_ref, w5g_ref, bd_ref, bg_ref,
                      o_ref, feat_ref, pbuf_ref,
                      *, nc, nc_p, gc_p, H, W, P, beta, neg_slope):
    """Fused ResidualDenseBlock forward for one batch element.

    Layout: activations are (channels, H*W) -- flat spatial index on lanes
    (dense), channels on sublanes; channel segments padded to multiples of 8.

    x_ref:     (1, nc, N)       f32 input image, N = H*W row-major
    w*_ref:    (9*cout, cin_p)  bf16 conv weights, 3x3 taps stacked along rows
    b*_ref:    (gc_p, 1)        f32 conv1..conv4 biases (zero-padded)
    bd/bg:     (1, nc, 1)       f32 per-sample conv5 biases (bias + c * W_cond)
    o_ref:     (1, nc, N)       output (lane-dense)
    feat_ref:  (ct_p, N)  VMEM  bf16 resident concatenated features [x|x1|..|x4]
    pbuf_ref:  (rows, N+2P) VMEM bf16 staging buffer so tap shifts are slices
    """
    N = H * W
    f32 = jnp.float32
    bf16 = jnp.bfloat16
    max_rows = 9 * max(gc_p, nc)

    # ---- x -> rows [0, nc) of the resident feature buffer; zero the (tiny)
    #      channel-pad rows so zero weight columns stay exact zeros ------------
    feat_ref[0:nc, :] = x_ref[0].astype(bf16)
    if nc_p > nc:
        feat_ref[nc:nc_p, :] = jnp.zeros((nc_p - nc, N), bf16)

    # ---- zero ONLY the two P-wide pad stripes (lane-aligned, once per step);
    #      the data region [P, P+N) is fully rewritten by every conv's matmul --
    stripe = jnp.zeros((max_rows, P), bf16)
    pbuf_ref[0:max_rows, 0:P] = stripe
    pbuf_ref[0:max_rows, P + N:P + N + P] = stripe

    # ---- column-validity masks: only the dx=+-1 taps need them (row validity
    #      is handled by the zeroed pad stripes), shape (1, N) -----------------
    col = jax.lax.broadcasted_iota(jnp.int32, (1, N), 1) % W
    m_left = col >= 1          # dx = -1 taps
    m_right = col <= W - 2     # dx = +1 taps

    def conv3x3(w_ref_, cin, cout, bias):
        """3x3 SAME conv of feat[:cin] -> (cout, N) f32, one MXU matmul."""
        rows = 9 * cout
        # prod[t*cout + co, s] = sum_ci w[ky,kx,ci,co] * feat[ci, s]
        pbuf_ref[0:rows, P:P + N] = jnp.dot(
            w_ref_[...], feat_ref[0:cin, :],
            preferred_element_type=f32).astype(bf16)
        # center tap (dy=0, dx=0, t=4) with the bias folded in
        acc = pbuf_ref[4 * cout:5 * cout, P:P + N].astype(f32) + bias
        for t in (0, 1, 2, 3, 5, 6, 7, 8):
            dy, dx = t // 3 - 1, t % 3 - 1
            s0 = P + dy * W + dx                       # static, >= 0 (P >= W+1)
            blk = pbuf_ref[t * cout:(t + 1) * cout, s0:s0 + N].astype(f32)
            if dx == -1:
                blk = jnp.where(m_left, blk, 0.0)
            elif dx == 1:
                blk = jnp.where(m_right, blk, 0.0)
            acc = acc + blk
        return acc

    # ---- conv1..conv4: conv + LeakyReLU, appended into feat (aligned) --------
    cin, off = nc_p, nc_p
    for w_r, b_r in ((w1_ref, b1_ref), (w2_ref, b2_ref),
                     (w3_ref, b3_ref), (w4_ref, b4_ref)):
        a = conv3x3(w_r, cin, gc_p, b_r[...])          # (gc_p, N) f32
        feat_ref[off:off + gc_p, :] = jnp.where(
            a >= 0, a, neg_slope * a).astype(bf16)
        cin += gc_p
        off += gc_p

    # ---- conv5 (gated), split into data / gate matmuls, + residual -----------
    data = conv3x3(w5d_ref, cin, nc, bd_ref[0])        # (nc, N) f32
    gate = conv3x3(w5g_ref, cin, nc, bg_ref[0])
    x5 = jnp.tanh(data) * jax.nn.sigmoid(gate)
    o_ref[0] = (x5 * beta + x_ref[0].astype(f32)).astype(o_ref.dtype)


def _round_up(v, m):
    return (v + m - 1) // m * m


def _stack_taps(w):
    """(3, 3, cin, cout) HWIO -> (9*cout, cin): rows ordered (ky*3+kx)*cout+co."""
    cin, cout = w.shape[2], w.shape[3]
    return jnp.transpose(w, (0, 1, 3, 2)).reshape(9 * cout, cin)


def _pad_channels(w, seg_real, seg_pad, cout_p):
    """Zero-pad input channels per segment (to match the padded feature layout)
    and output channels to cout_p.  w: (3, 3, cin, cout) HWIO."""
    kh, kw, _, cout = w.shape
    cin_p = sum(seg_pad)
    out = jnp.zeros((kh, kw, cin_p, cout_p), w.dtype)
    off_r = off_p = 0
    for r, p in zip(seg_real, seg_pad):
        out = out.at[:, :, off_p:off_p + r, :cout].set(w[:, :, off_r:off_r + r, :])
        off_r += r
        off_p += p
    return out


def residual_dense_block(x_nchw, c, params, *, beta=0.2):
    """x_nchw: (B, nc, H, W) like PyTorch; c: (B,) per-sample conditioning."""
    B, nc, H, W = x_nchw.shape
    gc = params["b1"].shape[0]
    N = H * W
    nc_p = _round_up(nc, 8)              # sublane-aligned feat segments
    gc_p = _round_up(gc, 8)
    ct_p = nc_p + 4 * gc_p
    max_rows = 9 * max(gc_p, nc)         # conv5 split -> no 9*2*nc buffer
    P = _round_up(W + 1, 128)            # lane-aligned slack for tap shifts
    bf16 = jnp.bfloat16

    # ---- stacked bf16 weights (zero-padded to the aligned channel layout) ----
    w_stk, b_stk = [], []
    for i in range(1, 5):
        seg_r = [nc] + [gc] * (i - 1)
        seg_p = [nc_p] + [gc_p] * (i - 1)
        w_stk.append(_stack_taps(
            _pad_channels(params[f"w{i}"], seg_r, seg_p, gc_p)).astype(bf16))
        b_stk.append(jnp.pad(params[f"b{i}"], (0, gc_p - gc)).reshape(gc_p, 1))
    seg_r = [nc] + [gc] * 4
    seg_p = [nc_p] + [gc_p] * 4
    w5d = _stack_taps(_pad_channels(params["w5d"], seg_r, seg_p, nc)).astype(bf16)
    w5g = _stack_taps(_pad_channels(params["w5g"], seg_r, seg_p, nc)).astype(bf16)

    # Fold the conditioning Linear(1, nc, bias=False) into per-sample biases.
    bias_d = (params["b5d"][None, :]
              + c[:, None] * params["w_cond_d"][None, :]).reshape(B, nc, 1)
    bias_g = (params["b5g"][None, :]
              + c[:, None] * params["w_cond_g"][None, :]).reshape(B, nc, 1)

    x_flat = x_nchw.reshape(B, nc, N)    # free: row-major collapse

    kernel = functools.partial(_rdb_fused_kernel, nc=nc, nc_p=nc_p, gc_p=gc_p,
                               H=H, W=W, P=P, beta=beta, neg_slope=0.2)

    def rep(arr):                        # whole-array, replicated block
        n = arr.ndim
        return pl.BlockSpec(arr.shape, lambda b: (0,) * n)

    per_b_x = pl.BlockSpec((1, nc, N), lambda b: (b, 0, 0))
    per_b_bias = pl.BlockSpec((1, nc, 1), lambda b: (b, 0, 0))

    # ---- VMEM budget: bf16 scratch + double-buffered I/O + replicated weights
    scratch_bytes = (ct_p * N + max_rows * (N + 2 * P)) * 2
    weight_bytes = 2 * sum(int(a.size) * a.dtype.itemsize
                           for a in w_stk + b_stk + [w5d, w5g])
    io_bytes = 2 * 2 * nc * N * x_nchw.dtype.itemsize + 2 * 2 * nc * 4
    need = scratch_bytes + weight_bytes + io_bytes
    vmem_limit = int(min(max(need * 1.25 + (2 << 20), 32 << 20), 64 << 20))

    out_flat = pl.pallas_call(
        kernel,
        out_shape=jax.ShapeDtypeStruct((B, nc, N), x_nchw.dtype),
        grid=(B,),
        in_specs=[
            per_b_x,                                    # x
            rep(w_stk[0]), rep(b_stk[0]),               # conv1
            rep(w_stk[1]), rep(b_stk[1]),               # conv2
            rep(w_stk[2]), rep(b_stk[2]),               # conv3
            rep(w_stk[3]), rep(b_stk[3]),               # conv4
            rep(w5d), rep(w5g),                         # conv5 data / gate
            per_b_bias, per_b_bias,                     # cond-folded biases
        ],
        out_specs=per_b_x,
        scratch_shapes=[
            pltpu.VMEM((ct_p, N), jnp.bfloat16),                 # feature buffer
            pltpu.VMEM((max_rows, N + 2 * P), jnp.bfloat16),     # tap staging
        ],
        compiler_params=pltpu.CompilerParams(
            dimension_semantics=("parallel",),
            vmem_limit_bytes=vmem_limit),
    )(x_flat, w_stk[0], b_stk[0], w_stk[1], b_stk[1], w_stk[2], b_stk[2],
      w_stk[3], b_stk[3], w5d, w5g, bias_d, bias_g)

    return out_flat.reshape(B, nc, H, W)


def init_params(key, nc, gc):
    keys = jax.random.split(key, 14)
    scale = 0.05

    def conv_w(k, cin, cout):
        return scale * jax.random.normal(k, (3, 3, cin, cout), jnp.float32)

    p = {}
    cins = [nc, nc + gc, nc + 2 * gc, nc + 3 * gc]
    for i, cin in enumerate(cins, start=1):
        p[f"w{i}"] = conv_w(keys[2 * i - 2], cin, gc)
        p[f"b{i}"] = scale * jax.random.normal(keys[2 * i - 1], (gc,), jnp.float32)
    cin5 = nc + 4 * gc
    p["w5d"] = conv_w(keys[8], cin5, nc)
    p["b5d"] = scale * jax.random.normal(keys[9], (nc,), jnp.float32)
    p["w5g"] = conv_w(keys[10], cin5, nc)
    p["b5g"] = scale * jax.random.normal(keys[11], (nc,), jnp.float32)
    # GatedConvLayer local conditioning: Linear(1, nc, bias=False), data & gate
    p["w_cond_d"] = scale * jax.random.normal(keys[12], (nc,), jnp.float32)
    p["w_cond_g"] = scale * jax.random.normal(keys[13], (nc,), jnp.float32)
    return p


def _reference_rdb(x, c, params, *, beta=0.2):
    """Pure-JAX/XLA reference (NCHW, HWIO) used only for the self-check."""
    def conv(v, w, b):
        y = jax.lax.conv_general_dilated(
            v, w, window_strides=(1, 1), padding="SAME",
            dimension_numbers=("NCHW", "HWIO", "NCHW"),
            precision=jax.lax.Precision.HIGHEST)
        return y + b[None, :, None, None]

    lrelu = lambda v: jnp.where(v >= 0, v, 0.2 * v)
    x1 = lrelu(conv(x, params["w1"], params["b1"]))
    x2 = lrelu(conv(jnp.concatenate([x, x1], 1), params["w2"], params["b2"]))
    x3 = lrelu(conv(jnp.concatenate([x, x1, x2], 1), params["w3"], params["b3"]))
    x4 = lrelu(conv(jnp.concatenate([x, x1, x2, x3], 1), params["w4"], params["b4"]))
    cat = jnp.concatenate([x, x1, x2, x3, x4], 1)
    cond_d = (c[:, None] * params["w_cond_d"][None, :])[:, :, None, None]
    cond_g = (c[:, None] * params["w_cond_g"][None, :])[:, :, None, None]
    d = conv(cat, params["w5d"], params["b5d"]) + cond_d
    g = conv(cat, params["w5g"], params["b5g"]) + cond_g
    x5 = jnp.tanh(d) * jax.nn.sigmoid(g)
    return x5 * beta + x


if __name__ == "__main__":
    B, NC, GC, H, W = 2, 4, 8, 16, 16           # B even -> both v7x TCs get work
    key = jax.random.PRNGKey(0)
    k_x, k_c, k_p = jax.random.split(key, 3)
    x = jax.random.normal(k_x, (B, NC, H, W), jnp.float32)   # NCHW, like PyTorch
    c = jax.random.uniform(k_c, (B,), jnp.float32)           # per-sample condition
    params = init_params(k_p, NC, GC)

    fwd = jax.jit(functools.partial(residual_dense_block, beta=0.2))
    out = fwd(x, c, params)
    jax.block_until_ready(out)
    assert out.shape == (B, NC, H, W) and out.dtype == jnp.float32

    ref = _reference_rdb(x, c, params, beta=0.2)
    # bf16 operands with f32 accumulation: expect ~1e-3 abs error at these
    # magnitudes; 5e-2 keeps plenty of margin.
    err = float(jnp.max(jnp.abs(out - ref)))
    assert err < 5e-2, f"kernel/reference mismatch: max abs err {err}"
    print("KERNEL_OK")
</pallas_src>

<mosaic_0001>
module attributes {stable_mosaic.version = 11 : i64} {
  func.func @_rdb_fused_kernel(%arg0: i32, %arg1: memref<1x4x256xf32, #tpu.memory_space<vmem>>, %arg2: memref<72x8xbf16, #tpu.memory_space<vmem>>, %arg3: memref<8x1xf32, #tpu.memory_space<vmem>>, %arg4: memref<72x16xbf16, #tpu.memory_space<vmem>>, %arg5: memref<8x1xf32, #tpu.memory_space<vmem>>, %arg6: memref<72x24xbf16, #tpu.memory_space<vmem>>, %arg7: memref<8x1xf32, #tpu.memory_space<vmem>>, %arg8: memref<72x32xbf16, #tpu.memory_space<vmem>>, %arg9: memref<8x1xf32, #tpu.memory_space<vmem>>, %arg10: memref<36x40xbf16, #tpu.memory_space<vmem>>, %arg11: memref<36x40xbf16, #tpu.memory_space<vmem>>, %arg12: memref<1x4x1xf32, #tpu.memory_space<vmem>>, %arg13: memref<1x4x1xf32, #tpu.memory_space<vmem>>, %arg14: memref<1x4x256xf32, #tpu.memory_space<vmem>>, %arg15: memref<40x256xbf16, #tpu.memory_space<vmem>>, %arg16: memref<72x512xbf16, #tpu.memory_space<vmem>>) attributes {dimension_semantics = [#tpu.dimension_semantics<parallel>], iteration_bounds = array<i64: 2>, scalar_prefetch = 0 : i64, scratch_operands = 2 : i64, tpu.core_type = #tpu.core_type<tc>, window_params = [{transform_indices = @transform_0, window_bounds = array<i64: 1, 4, 256>}, {pipeline_mode = #tpu.pipeline_mode<synchronous>, transform_indices = @transform_1, window_bounds = array<i64: 72, 8>}, {pipeline_mode = #tpu.pipeline_mode<synchronous>, transform_indices = @transform_2, window_bounds = array<i64: 8, 1>}, {pipeline_mode = #tpu.pipeline_mode<synchronous>, transform_indices = @transform_3, window_bounds = array<i64: 72, 16>}, {pipeline_mode = #tpu.pipeline_mode<synchronous>, transform_indices = @transform_4, window_bounds = array<i64: 8, 1>}, {pipeline_mode = #tpu.pipeline_mode<synchronous>, transform_indices = @transform_5, window_bounds = array<i64: 72, 24>}, {pipeline_mode = #tpu.pipeline_mode<synchronous>, transform_indices = @transform_6, window_bounds = array<i64: 8, 1>}, {pipeline_mode = #tpu.pipeline_mode<synchronous>, transform_indices = @transform_7, window_bounds = array<i64: 72, 32>}, {pipeline_mode = #tpu.pipeline_mode<synchronous>, transform_indices = @transform_8, window_bounds = array<i64: 8, 1>}, {pipeline_mode = #tpu.pipeline_mode<synchronous>, transform_indices = @transform_9, window_bounds = array<i64: 36, 40>}, {pipeline_mode = #tpu.pipeline_mode<synchronous>, transform_indices = @transform_10, window_bounds = array<i64: 36, 40>}, {transform_indices = @transform_11, window_bounds = array<i64: 1, 4, 1>}, {transform_indices = @transform_12, window_bounds = array<i64: 1, 4, 1>}, {transform_indices = @transform_13, window_bounds = array<i64: 1, 4, 256>}]} {
    %c0 = arith.constant 0 : index
    %c0_0 = arith.constant 0 : index
    %c0_1 = arith.constant 0 : index
    %0 = vector.load %arg1[%c0, %c0_0, %c0_1] : memref<1x4x256xf32, #tpu.memory_space<vmem>>, vector<1x4x256xf32>
    %1 = vector.shape_cast %0 : vector<1x4x256xf32> to vector<4x256xf32>
    %2 = arith.truncf %1 : vector<4x256xf32> to vector<4x256xbf16>
    %c0_2 = arith.constant 0 : index
    %c0_3 = arith.constant 0 : index
    %3 = vector.load %arg15[%c0_2, %c0_3] : memref<40x256xbf16, #tpu.memory_space<vmem>>, vector<4x256xbf16>
    tpu.vector_store %arg15[%c0_2, %c0_3], %2 {strides = array<i32>} : memref<40x256xbf16, #tpu.memory_space<vmem>>, vector<4x256xbf16>,
    %cst = arith.constant 0.000000e+00 : bf16
    %4 = vector.broadcast %cst : bf16 to vector<4x256xbf16>
    %c4 = arith.constant 4 : index
    %c0_4 = arith.constant 0 : index
    %5 = vector.load %arg15[%c4, %c0_4] : memref<40x256xbf16, #tpu.memory_space<vmem>>, vector<4x256xbf16>
    tpu.vector_store %arg15[%c4, %c0_4], %4 {strides = array<i32>} : memref<40x256xbf16, #tpu.memory_space<vmem>>, vector<4x256xbf16>,
    %cst_5 = arith.constant 0.000000e+00 : bf16
    %6 = vector.broadcast %cst_5 : bf16 to vector<72x128xbf16>
    %c0_6 = arith.constant 0 : index
    %c0_7 = arith.constant 0 : index
    %7 = vector.load %arg16[%c0_6, %c0_7] : memref<72x512xbf16, #tpu.memory_space<vmem>>, vector<72x128xbf16>
    tpu.vector_store %arg16[%c0_6, %c0_7], %6 {strides = array<i32>} : memref<72x512xbf16, #tpu.memory_space<vmem>>, vector<72x128xbf16>,
    %c0_8 = arith.constant 0 : index
    %c384 = arith.constant 384 : index
    %8 = vector.load %arg16[%c0_8, %c384] : memref<72x512xbf16, #tpu.memory_space<vmem>>, vector<72x128xbf16>
    tpu.vector_store %arg16[%c0_8, %c384], %6 {strides = array<i32>} : memref<72x512xbf16, #tpu.memory_space<vmem>>, vector<72x128xbf16>,
    %9 = tpu.iota {dimensions = array<i32: 1>} : vector<1x256xi32>
    %c16_i32 = arith.constant 16 : i32
    %c0_i32 = arith.constant 0 : i32
    %10 = arith.cmpi eq, %c16_i32, %c0_i32 : i32
    %c1_i32 = arith.constant 1 : i32
    %11 = arith.select %10, %c1_i32, %c16_i32 : i32
    %12 = vector.broadcast %11 : i32 to vector<1x256xi32>
    %13 = arith.remsi %9, %12 : vector<1x256xi32>
    %c0_i32_9 = arith.constant 0 : i32
    %14 = vector.broadcast %c0_i32_9 : i32 to vector<1x256xi32>
    %15 = arith.cmpi ne, %13, %14 : vector<1x256xi32>
    %c0_i32_10 = arith.constant 0 : i32
    %16 = vector.broadcast %c0_i32_10 : i32 to vector<1x256xi32>
    %17 = arith.cmpi slt, %13, %16 : vector<1x256xi32>
    %c0_i32_11 = arith.constant 0 : i32
    %18 = arith.cmpi slt, %11, %c0_i32_11 : i32
    %19 = vector.broadcast %18 : i1 to vector<1x256xi1>
    %20 = vector.broadcast %19 : vector<1x256xi1> to vector<1x256xi1>
    %21 = arith.xori %17, %20 : vector<1x256xi1>
    %22 = arith.andi %21, %15 : vector<1x256xi1>
    %23 = vector.broadcast %11 : i32 to vector<1x256xi32>
    %24 = arith.addi %13, %23 : vector<1x256xi32>
    %25 = arith.select %22, %24, %13 : vector<1x256xi1>, vector<1x256xi32>
    %c1_i32_12 = arith.constant 1 : i32
    %26 = vector.broadcast %c1_i32_12 : i32 to vector<1x256xi32>
    %27 = arith.cmpi sge, %25, %26 : vector<1x256xi32>
    %c14_i32 = arith.constant 14 : i32
    %28 = vector.broadcast %c14_i32 : i32 to vector<1x256xi32>
    %29 = arith.cmpi sle, %25, %28 : vector<1x256xi32>
    %c0_13 = arith.constant 0 : index
    %c0_14 = arith.constant 0 : index
    %30 = vector.load %arg3[%c0_13, %c0_14] : memref<8x1xf32, #tpu.memory_space<vmem>>, vector<8x1xf32>
    %c0_15 = arith.constant 0 : index
    %c0_16 = arith.constant 0 : index
    %31 = vector.load %arg2[%c0_15, %c0_16] : memref<72x8xbf16, #tpu.memory_space<vmem>>, vector<72x8xbf16>
    %c0_17 = arith.constant 0 : index
    %c0_18 = arith.constant 0 : index
    %32 = vector.load %arg15[%c0_17, %c0_18] : memref<40x256xbf16, #tpu.memory_space<vmem>>, vector<8x256xbf16>
    %cst_19 = arith.constant dense<0.000000e+00> : vector<72x256xf32>
    %33 = tpu.matmul %31, %32, %cst_19 {dimension_numbers = #tpu.dot_dimension_numbers<[1], [0], [0], [1], [0, 0, 1, 1], [], []>} : vector<72x8xbf16>, vector<8x256xbf16>, vector<72x256xf32> -> vector<72x256xf32>
    %34 = arith.truncf %33 : vector<72x256xf32> to vector<72x256xbf16>
    %c0_20 = arith.constant 0 : index
    %c128 = arith.constant 128 : index
    %35 = vector.load %arg16[%c0_20, %c128] : memref<72x512xbf16, #tpu.memory_space<vmem>>, vector<72x256xbf16>
    tpu.vector_store %arg16[%c0_20, %c128], %34 {strides = array<i32>} : memref<72x512xbf16, #tpu.memory_space<vmem>>, vector<72x256xbf16>,
    %c32 = arith.constant 32 : index
    %c128_21 = arith.constant 128 : index
    %36 = vector.load %arg16[%c32, %c128_21] : memref<72x512xbf16, #tpu.memory_space<vmem>>, vector<8x256xbf16>
    %37 = arith.extf %36 : vector<8x256xbf16> to vector<8x256xf32>
    %38 = vector.broadcast %30 : vector<8x1xf32> to vector<8x256xf32>
    %39 = arith.addf %37, %38 : vector<8x256xf32>
    %c0_22 = arith.constant 0 : index
    %c111 = arith.constant 111 : index
    %40 = vector.load %arg16[%c0_22, %c111] : memref<72x512xbf16, #tpu.memory_space<vmem>>, vector<8x256xbf16>
    %41 = arith.extf %40 : vector<8x256xbf16> to vector<8x256xf32>
    %cst_23 = arith.constant 0.000000e+00 : f32
    %42 = vector.shape_cast %27 : vector<1x256xi1> to vector<1x256xi1>
    %43 = vector.broadcast %42 : vector<1x256xi1> to vector<8x256xi1>
    %44 = vector.broadcast %cst_23 : f32 to vector<8x256xf32>
    %45 = arith.select %43, %41, %44 : vector<8x256xi1>, vector<8x256xf32>
    %46 = arith.addf %39, %45 : vector<8x256xf32>
    %c8 = arith.constant 8 : index
    %c112 = arith.constant 112 : index
    %47 = vector.load %arg16[%c8, %c112] : memref<72x512xbf16, #tpu.memory_space<vmem>>, vector<8x256xbf16>
    %48 = arith.extf %47 : vector<8x256xbf16> to vector<8x256xf32>
    %49 = arith.addf %46, %48 : vector<8x256xf32>
    %c16 = arith.constant 16 : index
    %c113 = arith.constant 113 : index
    %50 = vector.load %arg16[%c16, %c113] : memref<72x512xbf16, #tpu.memory_space<vmem>>, vector<8x256xbf16>
    %51 = arith.extf %50 : vector<8x256xbf16> to vector<8x256xf32>
    %cst_24 = arith.constant 0.000000e+00 : f32
    %52 = vector.shape_cast %29 : vector<1x256xi1> to vector<1x256xi1>
    %53 = vector.broadcast %52 : vector<1x256xi1> to vector<8x256xi1>
    %54 = vector.broadcast %cst_24 : f32 to vector<8x256xf32>
    %55 = arith.select %53, %51, %54 : vector<8x256xi1>, vector<8x256xf32>
    %56 = arith.addf %49, %55 : vector<8x256xf32>
    %c24 = arith.constant 24 : index
    %c127 = arith.constant 127 : index
    %57 = vector.load %arg16[%c24, %c127] : memref<72x512xbf16, #tpu.memory_space<vmem>>, vector<8x256xbf16>
    %58 = arith.extf %57 : vector<8x256xbf16> to vector<8x256xf32>
    %cst_25 = arith.constant 0.000000e+00 : f32
    %59 = vector.shape_cast %27 : vector<1x256xi1> to vector<1x256xi1>
    %60 = vector.broadcast %59 : vector<1x256xi1> to vector<8x256xi1>
    %61 = vector.broadcast %cst_25 : f32 to vector<8x256xf32>
    %62 = arith.select %60, %58, %61 : vector<8x256xi1>, vector<8x256xf32>
    %63 = arith.addf %56, %62 : vector<8x256xf32>
    %c40 = arith.constant 40 : index
    %c129 = arith.constant 129 : index
    %64 = vector.load %arg16[%c40, %c129] : memref<72x512xbf16, #tpu.memory_space<vmem>>, vector<8x256xbf16>
    %65 = arith.extf %64 : vector<8x256xbf16> to vector<8x256xf32>
    %cst_26 = arith.constant 0.000000e+00 : f32
    %66 = vector.shape_cast %29 : vector<1x256xi1> to vector<1x256xi1>
    %67 = vector.broadcast %66 : vector<1x256xi1> to vector<8x256xi1>
    %68 = vector.broadcast %cst_26 : f32 to vector<8x256xf32>
    %69 = arith.select %67, %65, %68 : vector<8x256xi1>, vector<8x256xf32>
    %70 = arith.addf %63, %69 : vector<8x256xf32>
    %c48 = arith.constant 48 : index
    %c143 = arith.constant 143 : index
    %71 = vector.load %arg16[%c48, %c143] : memref<72x512xbf16, #tpu.memory_space<vmem>>, vector<8x256xbf16>
    %72 = arith.extf %71 : vector<8x256xbf16> to vector<8x256xf32>
    %cst_27 = arith.constant 0.000000e+00 : f32
    %73 = vector.shape_cast %27 : vector<1x256xi1> to vector<1x256xi1>
    %74 = vector.broadcast %73 : vector<1x256xi1> to vector<8x256xi1>
    %75 = vector.broadcast %cst_27 : f32 to vector<8x256xf32>
    %76 = arith.select %74, %72, %75 : vector<8x256xi1>, vector<8x256xf32>
    %77 = arith.addf %70, %76 : vector<8x256xf32>
    %c56 = arith.constant 56 : index
    %c144 = arith.constant 144 : index
    %78 = vector.load %arg16[%c56, %c144] : memref<72x512xbf16, #tpu.memory_space<vmem>>, vector<8x256xbf16>
    %79 = arith.extf %78 : vector<8x256xbf16> to vector<8x256xf32>
    %80 = arith.addf %77, %79 : vector<8x256xf32>
    %c64 = arith.constant 64 : index
    %c145 = arith.constant 145 : index
    %81 = vector.load %arg16[%c64, %c145] : memref<72x512xbf16, #tpu.memory_space<vmem>>, vector<8x256xbf16>
    %82 = arith.extf %81 : vector<8x256xbf16> to vector<8x256xf32>
    %cst_28 = arith.constant 0.000000e+00 : f32
    %83 = vector.shape_cast %29 : vector<1x256xi1> to vector<1x256xi1>
    %84 = vector.broadcast %83 : vector<1x256xi1> to vector<8x256xi1>
    %85 = vector.broadcast %cst_28 : f32 to vector<8x256xf32>
    %86 = arith.select %84, %82, %85 : vector<8x256xi1>, vector<8x256xf32>
    %87 = arith.addf %80, %86 : vector<8x256xf32>
    %cst_29 = arith.constant 0.000000e+00 : f32
    %88 = vector.broadcast %cst_29 : f32 to vector<8x256xf32>
    %89 = arith.cmpf oge, %87, %88 : vector<8x256xf32>
    %cst_30 = arith.constant 2.000000e-01 : f32
    %90 = vector.broadcast %cst_30 : f32 to vector<8x256xf32>
    %91 = arith.mulf %90, %87 : vector<8x256xf32>
    %92 = arith.select %89, %87, %91 : vector<8x256xi1>, vector<8x256xf32>
    %93 = arith.truncf %92 : vector<8x256xf32> to vector<8x256xbf16>
    %c8_31 = arith.constant 8 : index
    %c0_32 = arith.constant 0 : index
    %94 = vector.load %arg15[%c8_31, %c0_32] : memref<40x256xbf16, #tpu.memory_space<vmem>>, vector<8x256xbf16>
    tpu.vector_store %arg15[%c8_31, %c0_32], %93 {strides = array<i32>} : memref<40x256xbf16, #tpu.memory_space<vmem>>, vector<8x256xbf16>,
    %c0_33 = arith.constant 0 : index
    %c0_34 = arith.constant 0 : index
    %95 = vector.load %arg5[%c0_33, %c0_34] : memref<8x1xf32, #tpu.memory_space<vmem>>, vector<8x1xf32>
    %c0_35 = arith.constant 0 : index
    %c0_36 = arith.constant 0 : index
    %96 = vector.load %arg4[%c0_35, %c0_36] : memref<72x16xbf16, #tpu.memory_space<vmem>>, vector<72x16xbf16>
    %c0_37 = arith.constant 0 : index
    %c0_38 = arith.constant 0 : index
    %97 = vector.load %arg15[%c0_37, %c0_38] : memref<40x256xbf16, #tpu.memory_space<vmem>>, vector<16x256xbf16>
    %cst_39 = arith.constant dense<0.000000e+00> : vector<72x256xf32>
    %98 = tpu.matmul %96, %97, %cst_39 {dimension_numbers = #tpu.dot_dimension_numbers<[1], [0], [0], [1], [0, 0, 1, 1], [], []>} : vector<72x16xbf16>, vector<16x256xbf16>, vector<72x256xf32> -> vector<72x256xf32>
    %99 = arith.truncf %98 : vector<72x256xf32> to vector<72x256xbf16>
    %c0_40 = arith.constant 0 : index
    %c128_41 = arith.constant 128 : index
    %100 = vector.load %arg16[%c0_40, %c128_41] : memref<72x512xbf16, #tpu.memory_space<vmem>>, vector<72x256xbf16>
    tpu.vector_store %arg16[%c0_40, %c128_41], %99 {strides = array<i32>} : memref<72x512xbf16, #tpu.memory_space<vmem>>, vector<72x256xbf16>,
    %c32_42 = arith.constant 32 : index
    %c128_43 = arith.constant 128 : index
    %101 = vector.load %arg16[%c32_42, %c128_43] : memref<72x512xbf16, #tpu.memory_space<vmem>>, vector<8x256xbf16>
    %102 = arith.extf %101 : vector<8x256xbf16> to vector<8x256xf32>
    %103 = vector.broadcast %95 : vector<8x1xf32> to vector<8x256xf32>
    %104 = arith.addf %102, %103 : vector<8x256xf32>
    %c0_44 = arith.constant 0 : index
    %c111_45 = arith.constant 111 : index
    %105 = vector.load %arg16[%c0_44, %c111_45] : memref<72x512xbf16, #tpu.memory_space<vmem>>, vector<8x256xbf16>
    %106 = arith.extf %105 : vector<8x256xbf16> to vector<8x256xf32>
    %cst_46 = arith.constant 0.000000e+00 : f32
    %107 = vector.shape_cast %27 : vector<1x256xi1> to vector<1x256xi1>
    %108 = vector.broadcast %107 : vector<1x256xi1> to vector<8x256xi1>
    %109 = vector.broadcast %cst_46 : f32 to vector<8x256xf32>
    %110 = arith.select %108, %106, %109 : vector<8x256xi1>, vector<8x256xf32>
    %111 = arith.addf %104, %110 : vector<8x256xf32>
    %c8_47 = arith.constant 8 : index
    %c112_48 = arith.constant 112 : index
    %112 = vector.load %arg16[%c8_47, %c112_48] : memref<72x512xbf16, #tpu.memory_space<vmem>>, vector<8x256xbf16>
    %113 = arith.extf %112 : vector<8x256xbf16> to vector<8x256xf32>
    %114 = arith.addf %111, %113 : vector<8x256xf32>
    %c16_49 = arith.constant 16 : index
    %c113_50 = arith.constant 113 : index
    %115 = vector.load %arg16[%c16_49, %c113_50] : memref<72x512xbf16, #tpu.memory_space<vmem>>, vector<8x256xbf16>
    %116 = arith.extf %115 : vector<8x256xbf16> to vector<8x256xf32>
    %cst_51 = arith.constant 0.000000e+00 : f32
    %117 = vector.shape_cast %29 : vector<1x256xi1> to vector<1x256xi1>
    %118 = vector.broadcast %117 : vector<1x256xi1> to vector<8x256xi1>
    %119 = vector.broadcast %cst_51 : f32 to vector<8x256xf32>
    %120 = arith.select %118, %116, %119 : vector<8x256xi1>, vector<8x256xf32>
    %121 = arith.addf %114, %120 : vector<8x256xf32>
    %c24_52 = arith.constant 24 : index
    %c127_53 = arith.constant 127 : index
    %122 = vector.load %arg16[%c24_52, %c127_53] : memref<72x512xbf16, #tpu.memory_space<vmem>>, vector<8x256xbf16>
    %123 = arith.extf %122 : vector<8x256xbf16> to vector<8x256xf32>
    %cst_54 = arith.constant 0.000000e+00 : f32
    %124 = vector.shape_cast %27 : vector<1x256xi1> to vector<1x256xi1>
    %125 = vector.broadcast %124 : vector<1x256xi1> to vector<8x256xi1>
    %126 = vector.broadcast %cst_54 : f32 to vector<8x256xf32>
    %127 = arith.select %125, %123, %126 : vector<8x256xi1>, vector<8x256xf32>
    %128 = arith.addf %121, %127 : vector<8x256xf32>
    %c40_55 = arith.constant 40 : index
    %c129_56 = arith.constant 129 : index
    %129 = vector.load %arg16[%c40_55, %c129_56] : memref<72x512xbf16, #tpu.memory_space<vmem>>, vector<8x256xbf16>
    %130 = arith.extf %129 : vector<8x256xbf16> to vector<8x256xf32>
    %cst_57 = arith.constant 0.000000e+00 : f32
    %131 = vector.shape_cast %29 : vector<1x256xi1> to vector<1x256xi1>
    %132 = vector.broadcast %131 : vector<1x256xi1> to vector<8x256xi1>
    %133 = vector.broadcast %cst_57 : f32 to vector<8x256xf32>
    %134 = arith.select %132, %130, %133 : vector<8x256xi1>, vector<8x256xf32>
    %135 = arith.addf %128, %134 : vector<8x256xf32>
    %c48_58 = arith.constant 48 : index
    %c143_59 = arith.constant 143 : index
    %136 = vector.load %arg16[%c48_58, %c143_59] : memref<72x512xbf16, #tpu.memory_space<vmem>>, vector<8x256xbf16>
    %137 = arith.extf %136 : vector<8x256xbf16> to vector<8x256xf32>
    %cst_60 = arith.constant 0.000000e+00 : f32
    %138 = vector.shape_cast %27 : vector<1x256xi1> to vector<1x256xi1>
    %139 = vector.broadcast %138 : vector<1x256xi1> to vector<8x256xi1>
    %140 = vector.broadcast %cst_60 : f32 to vector<8x256xf32>
    %141 = arith.select %139, %137, %140 : vector<8x256xi1>, vector<8x256xf32>
    %142 = arith.addf %135, %141 : vector<8x256xf32>
    %c56_61 = arith.constant 56 : index
    %c144_62 = arith.constant 144 : index
    %143 = vector.load %arg16[%c56_61, %c144_62] : memref<72x512xbf16, #tpu.memory_space<vmem>>, vector<8x256xbf16>
    %144 = arith.extf %143 : vector<8x256xbf16> to vector<8x256xf32>
    %145 = arith.addf %142, %144 : vector<8x256xf32>
    %c64_63 = arith.constant 64 : index
    %c145_64 = arith.constant 145 : index
    %146 = vector.load %arg16[%c64_63, %c145_64] : memref<72x512xbf16, #tpu.memory_space<vmem>>, vector<8x256xbf16>
    %147 = arith.extf %146 : vector<8x256xbf16> to vector<8x256xf32>
    %cst_65 = arith.constant 0.000000e+00 : f32
    %148 = vector.shape_cast %29 : vector<1x256xi1> to vector<1x256xi1>
    %149 = vector.broadcast %148 : vector<1x256xi1> to vector<8x256xi1>
    %150 = vector.broadcast %cst_65 : f32 to vector<8x256xf32>
    %151 = arith.select %149, %147, %150 : vector<8x256xi1>, vector<8x256xf32>
    %152 = arith.addf %145, %151 : vector<8x256xf32>
    %cst_66 = arith.constant 0.000000e+00 : f32
    %153 = vector.broadcast %cst_66 : f32 to vector<8x256xf32>
    %154 = arith.cmpf oge, %152, %153 : vector<8x256xf32>
    %cst_67 = arith.constant 2.000000e-01 : f32
    %155 = vector.broadcast %cst_67 : f32 to vector<8x256xf32>
    %156 = arith.mulf %155, %152 : vector<8x256xf32>
    %157 = arith.select %154, %152, %156 : vector<8x256xi1>, vector<8x256xf32>
    %158 = arith.truncf %157 : vector<8x256xf32> to vector<8x256xbf16>
    %c16_68 = arith.constant 16 : index
    %c0_69 = arith.constant 0 : index
    %159 = vector.load %arg15[%c16_68, %c0_69] : memref<40x256xbf16, #tpu.memory_space<vmem>>, vector<8x256xbf16>
    tpu.vector_store %arg15[%c16_68, %c0_69], %158 {strides = array<i32>} : memref<40x256xbf16, #tpu.memory_space<vmem>>, vector<8x256xbf16>,
    %c0_70 = arith.constant 0 : index
    %c0_71 = arith.constant 0 : index
    %160 = vector.load %arg7[%c0_70, %c0_71] : memref<8x1xf32, #tpu.memory_space<vmem>>, vector<8x1xf32>
    %c0_72 = arith.constant 0 : index
    %c0_73 = arith.constant 0 : index
    %161 = vector.load %arg6[%c0_72, %c0_73] : memref<72x24xbf16, #tpu.memory_space<vmem>>, vector<72x24xbf16>
    %c0_74 = arith.constant 0 : index
    %c0_75 = arith.constant 0 : index
    %162 = vector.load %arg15[%c0_74, %c0_75] : memref<40x256xbf16, #tpu.memory_space<vmem>>, vector<24x256xbf16>
    %cst_76 = arith.constant dense<0.000000e+00> : vector<72x256xf32>
    %163 = tpu.matmul %161, %162, %cst_76 {dimension_numbers = #tpu.dot_dimension_numbers<[1], [0], [0], [1], [0, 0, 1, 1], [], []>} : vector<72x24xbf16>, vector<24x256xbf16>, vector<72x256xf32> -> vector<72x256xf32>
    %164 = arith.truncf %163 : vector<72x256xf32> to vector<72x256xbf16>
    %c0_77 = arith.constant 0 : index
    %c128_78 = arith.constant 128 : index
    %165 = vector.load %arg16[%c0_77, %c128_78] : memref<72x512xbf16, #tpu.memory_space<vmem>>, vector<72x256xbf16>
    tpu.vector_store %arg16[%c0_77, %c128_78], %164 {strides = array<i32>} : memref<72x512xbf16, #tpu.memory_space<vmem>>, vector<72x256xbf16>,
    %c32_79 = arith.constant 32 : index
    %c128_80 = arith.constant 128 : index
    %166 = vector.load %arg16[%c32_79, %c128_80] : memref<72x512xbf16, #tpu.memory_space<vmem>>, vector<8x256xbf16>
    %167 = arith.extf %166 : vector<8x256xbf16> to vector<8x256xf32>
    %168 = vector.broadcast %160 : vector<8x1xf32> to vector<8x256xf32>
    %169 = arith.addf %167, %168 : vector<8x256xf32>
    %c0_81 = arith.constant 0 : index
    %c111_82 = arith.constant 111 : index
    %170 = vector.load %arg16[%c0_81, %c111_82] : memref<72x512xbf16, #tpu.memory_space<vmem>>, vector<8x256xbf16>
    %171 = arith.extf %170 : vector<8x256xbf16> to vector<8x256xf32>
    %cst_83 = arith.constant 0.000000e+00 : f32
    %172 = vector.shape_cast %27 : vector<1x256xi1> to vector<1x256xi1>
    %173 = vector.broadcast %172 : vector<1x256xi1> to vector<8x256xi1>
    %174 = vector.broadcast %cst_83 : f32 to vector<8x256xf32>
    %175 = arith.select %173, %171, %174 : vector<8x256xi1>, vector<8x256xf32>
    %176 = arith.addf %169, %175 : vector<8x256xf32>
    %c8_84 = arith.constant 8 : index
    %c112_85 = arith.constant 112 : index
    %177 = vector.load %arg16[%c8_84, %c112_85] : memref<72x512xbf16, #tpu.memory_space<vmem>>, vector<8x256xbf16>
    %178 = arith.extf %177 : vector<8x256xbf16> to vector<8x256xf32>
    %179 = arith.addf %176, %178 : vector<8x256xf32>
    %c16_86 = arith.constant 16 : index
    %c113_87 = arith.constant 113 : index
    %180 = vector.load %arg16[%c16_86, %c113_87] : memref<72x512xbf16, #tpu.memory_space<vmem>>, vector<8x256xbf16>
    %181 = arith.extf %180 : vector<8x256xbf16> to vector<8x256xf32>
    %cst_88 = arith.constant 0.000000e+00 : f32
    %182 = vector.shape_cast %29 : vector<1x256xi1> to vector<1x256xi1>
    %183 = vector.broadcast %182 : vector<1x256xi1> to vector<8x256xi1>
    %184 = vector.broadcast %cst_88 : f32 to vector<8x256xf32>
    %185 = arith.select %183, %181, %184 : vector<8x256xi1>, vector<8x256xf32>
    %186 = arith.addf %179, %185 : vector<8x256xf32>
    %c24_89 = arith.constant 24 : index
    %c127_90 = arith.constant 127 : index
    %187 = vector.load %arg16[%c24_89, %c127_90] : memref<72x512xbf16, #tpu.memory_space<vmem>>, vector<8x256xbf16>
    %188 = arith.extf %187 : vector<8x256xbf16> to vector<8x256xf32>
    %cst_91 = arith.constant 0.000000e+00 : f32
    %189 = vector.shape_cast %27 : vector<1x256xi1> to vector<1x256xi1>
    %190 = vector.broadcast %189 : vector<1x256xi1> to vector<8x256xi1>
    %191 = vector.broadcast %cst_91 : f32 to vector<8x256xf32>
    %192 = arith.select %190, %188, %191 : vector<8x256xi1>, vector<8x256xf32>
    %193 = arith.addf %186, %192 : vector<8x256xf32>
    %c40_92 = arith.constant 40 : index
    %c129_93 = arith.constant 129 : index
    %194 = vector.load %arg16[%c40_92, %c129_93] : memref<72x512xbf16, #tpu.memory_space<vmem>>, vector<8x256xbf16>
    %195 = arith.extf %194 : vector<8x256xbf16> to vector<8x256xf32>
    %cst_94 = arith.constant 0.000000e+00 : f32
    %196 = vector.shape_cast %29 : vector<1x256xi1> to vector<1x256xi1>
    %197 = vector.broadcast %196 : vector<1x256xi1> to vector<8x256xi1>
    %198 = vector.broadcast %cst_94 : f32 to vector<8x256xf32>
    %199 = arith.select %197, %195, %198 : vector<8x256xi1>, vector<8x256xf32>
    %200 = arith.addf %193, %199 : vector<8x256xf32>
    %c48_95 = arith.constant 48 : index
    %c143_96 = arith.constant 143 : index
    %201 = vector.load %arg16[%c48_95, %c143_96] : memref<72x512xbf16, #tpu.memory_space<vmem>>, vector<8x256xbf16>
    %202 = arith.extf %201 : vector<8x256xbf16> to vector<8x256xf32>
    %cst_97 = arith.constant 0.000000e+00 : f32
    %203 = vector.shape_cast %27 : vector<1x256xi1> to vector<1x256xi1>
    %204 = vector.broadcast %203 : vector<1x256xi1> to vector<8x256xi1>
    %205 = vector.broadcast %cst_97 : f32 to vector<8x256xf32>
    %206 = arith.select %204, %202, %205 : vector<8x256xi1>, vector<8x256xf32>
    %207 = arith.addf %200, %206 : vector<8x256xf32>
    %c56_98 = arith.constant 56 : index
    %c144_99 = arith.constant 144 : index
    %208 = vector.load %arg16[%c56_98, %c144_99] : memref<72x512xbf16, #tpu.memory_space<vmem>>, vector<8x256xbf16>
    %209 = arith.extf %208 : vector<8x256xbf16> to vector<8x256xf32>
    %210 = arith.addf %207, %209 : vector<8x256xf32>
    %c64_100 = arith.constant 64 : index
    %c145_101 = arith.constant 145 : index
    %211 = vector.load %arg16[%c64_100, %c145_101] : memref<72x512xbf16, #tpu.memory_space<vmem>>, vector<8x256xbf16>
    %212 = arith.extf %211 : vector<8x256xbf16> to vector<8x256xf32>
    %cst_102 = arith.constant 0.000000e+00 : f32
    %213 = vector.shape_cast %29 : vector<1x256xi1> to vector<1x256xi1>
    %214 = vector.broadcast %213 : vector<1x256xi1> to vector<8x256xi1>
    %215 = vector.broadcast %cst_102 : f32 to vector<8x256xf32>
    %216 = arith.select %214, %212, %215 : vector<8x256xi1>, vector<8x256xf32>
    %217 = arith.addf %210, %216 : vector<8x256xf32>
    %cst_103 = arith.constant 0.000000e+00 : f32
    %218 = vector.broadcast %cst_103 : f32 to vector<8x256xf32>
    %219 = arith.cmpf oge, %217, %218 : vector<8x256xf32>
    %cst_104 = arith.constant 2.000000e-01 : f32
    %220 = vector.broadcast %cst_104 : f32 to vector<8x256xf32>
    %221 = arith.mulf %220, %217 : vector<8x256xf32>
    %222 = arith.select %219, %217, %221 : vector<8x256xi1>, vector<8x256xf32>
    %223 = arith.truncf %222 : vector<8x256xf32> to vector<8x256xbf16>
    %c24_105 = arith.constant 24 : index
    %c0_106 = arith.constant 0 : index
    %224 = vector.load %arg15[%c24_105, %c0_106] : memref<40x256xbf16, #tpu.memory_space<vmem>>, vector<8x256xbf16>
    tpu.vector_store %arg15[%c24_105, %c0_106], %223 {strides = array<i32>} : memref<40x256xbf16, #tpu.memory_space<vmem>>, vector<8x256xbf16>,
    %c0_107 = arith.constant 0 : index
    %c0_108 = arith.constant 0 : index
    %225 = vector.load %arg9[%c0_107, %c0_108] : memref<8x1xf32, #tpu.memory_space<vmem>>, vector<8x1xf32>
    %c0_109 = arith.constant 0 : index
    %c0_110 = arith.constant 0 : index
    %226 = vector.load %arg8[%c0_109, %c0_110] : memref<72x32xbf16, #tpu.memory_space<vmem>>, vector<72x32xbf16>
    %c0_111 = arith.constant 0 : index
    %c0_112 = arith.constant 0 : index
    %227 = vector.load %arg15[%c0_111, %c0_112] : memref<40x256xbf16, #tpu.memory_space<vmem>>, vector<32x256xbf16>
    %cst_113 = arith.constant dense<0.000000e+00> : vector<72x256xf32>
    %228 = tpu.matmul %226, %227, %cst_113 {dimension_numbers = #tpu.dot_dimension_numbers<[1], [0], [0], [1], [0, 0, 1, 1], [], []>} : vector<72x32xbf16>, vector<32x256xbf16>, vector<72x256xf32> -> vector<72x256xf32>
    %229 = arith.truncf %228 : vector<72x256xf32> to vector<72x256xbf16>
    %c0_114 = arith.constant 0 : index
    %c128_115 = arith.constant 128 : index
    %230 = vector.load %arg16[%c0_114, %c128_115] : memref<72x512xbf16, #tpu.memory_space<vmem>>, vector<72x256xbf16>
    tpu.vector_store %arg16[%c0_114, %c128_115], %229 {strides = array<i32>} : memref<72x512xbf16, #tpu.memory_space<vmem>>, vector<72x256xbf16>,
    %c32_116 = arith.constant 32 : index
    %c128_117 = arith.constant 128 : index
    %231 = vector.load %arg16[%c32_116, %c128_117] : memref<72x512xbf16, #tpu.memory_space<vmem>>, vector<8x256xbf16>
    %232 = arith.extf %231 : vector<8x256xbf16> to vector<8x256xf32>
    %233 = vector.broadcast %225 : vector<8x1xf32> to vector<8x256xf32>
    %234 = arith.addf %232, %233 : vector<8x256xf32>
    %c0_118 = arith.constant 0 : index
    %c111_119 = arith.constant 111 : index
    %235 = vector.load %arg16[%c0_118, %c111_119] : memref<72x512xbf16, #tpu.memory_space<vmem>>, vector<8x256xbf16>
    %236 = arith.extf %235 : vector<8x256xbf16> to vector<8x256xf32>
    %cst_120 = arith.constant 0.000000e+00 : f32
    %237 = vector.shape_cast %27 : vector<1x256xi1> to vector<1x256xi1>
    %238 = vector.broadcast %237 : vector<1x256xi1> to vector<8x256xi1>
    %239 = vector.broadcast %cst_120 : f32 to vector<8x256xf32>
    %240 = arith.select %238, %236, %239 : vector<8x256xi1>, vector<8x256xf32>
    %241 = arith.addf %234, %240 : vector<8x256xf32>
    %c8_121 = arith.constant 8 : index
    %c112_122 = arith.constant 112 : index
    %242 = vector.load %arg16[%c8_121, %c112_122] : memref<72x512xbf16, #tpu.memory_space<vmem>>, vector<8x256xbf16>
    %243 = arith.extf %242 : vector<8x256xbf16> to vector<8x256xf32>
    %244 = arith.addf %241, %243 : vector<8x256xf32>
    %c16_123 = arith.constant 16 : index
    %c113_124 = arith.constant 113 : index
    %245 = vector.load %arg16[%c16_123, %c113_124] : memref<72x512xbf16, #tpu.memory_space<vmem>>, vector<8x256xbf16>
    %246 = arith.extf %245 : vector<8x256xbf16> to vector<8x256xf32>
    %cst_125 = arith.constant 0.000000e+00 : f32
    %247 = vector.shape_cast %29 : vector<1x256xi1> to vector<1x256xi1>
    %248 = vector.broadcast %247 : vector<1x256xi1> to vector<8x256xi1>
    %249 = vector.broadcast %cst_125 : f32 to vector<8x256xf32>
    %250 = arith.select %248, %246, %249 : vector<8x256xi1>, vector<8x256xf32>
    %251 = arith.addf %244, %250 : vector<8x256xf32>
    %c24_126 = arith.constant 24 : index
    %c127_127 = arith.constant 127 : index
    %252 = vector.load %arg16[%c24_126, %c127_127] : memref<72x512xbf16, #tpu.memory_space<vmem>>, vector<8x256xbf16>
    %253 = arith.extf %252 : vector<8x256xbf16> to vector<8x256xf32>
    %cst_128 = arith.constant 0.000000e+00 : f32
    %254 = vector.shape_cast %27 : vector<1x256xi1> to vector<1x256xi1>
    %255 = vector.broadcast %254 : vector<1x256xi1> to vector<8x256xi1>
    %256 = vector.broadcast %cst_128 : f32 to vector<8x256xf32>
    %257 = arith.select %255, %253, %256 : vector<8x256xi1>, vector<8x256xf32>
    %258 = arith.addf %251, %257 : vector<8x256xf32>
    %c40_129 = arith.constant 40 : index
    %c129_130 = arith.constant 129 : index
    %259 = vector.load %arg16[%c40_129, %c129_130] : memref<72x512xbf16, #tpu.memory_space<vmem>>, vector<8x256xbf16>
    %260 = arith.extf %259 : vector<8x256xbf16> to vector<8x256xf32>
    %cst_131 = arith.constant 0.000000e+00 : f32
    %261 = vector.shape_cast %29 : vector<1x256xi1> to vector<1x256xi1>
    %262 = vector.broadcast %261 : vector<1x256xi1> to vector<8x256xi1>
    %263 = vector.broadcast %cst_131 : f32 to vector<8x256xf32>
    %264 = arith.select %262, %260, %263 : vector<8x256xi1>, vector<8x256xf32>
    %265 = arith.addf %258, %264 : vector<8x256xf32>
    %c48_132 = arith.constant 48 : index
    %c143_133 = arith.constant 143 : index
    %266 = vector.load %arg16[%c48_132, %c143_133] : memref<72x512xbf16, #tpu.memory_space<vmem>>, vector<8x256xbf16>
    %267 = arith.extf %266 : vector<8x256xbf16> to vector<8x256xf32>
    %cst_134 = arith.constant 0.000000e+00 : f32
    %268 = vector.shape_cast %27 : vector<1x256xi1> to vector<1x256xi1>
    %269 = vector.broadcast %268 : vector<1x256xi1> to vector<8x256xi1>
    %270 = vector.broadcast %cst_134 : f32 to vector<8x256xf32>
    %271 = arith.select %269, %267, %270 : vector<8x256xi1>, vector<8x256xf32>
    %272 = arith.addf %265, %271 : vector<8x256xf32>
    %c56_135 = arith.constant 56 : index
    %c144_136 = arith.constant 144 : index
    %273 = vector.load %arg16[%c56_135, %c144_136] : memref<72x512xbf16, #tpu.memory_space<vmem>>, vector<8x256xbf16>
    %274 = arith.extf %273 : vector<8x256xbf16> to vector<8x256xf32>
    %275 = arith.addf %272, %274 : vector<8x256xf32>
    %c64_137 = arith.constant 64 : index
    %c145_138 = arith.constant 145 : index
    %276 = vector.load %arg16[%c64_137, %c145_138] : memref<72x512xbf16, #tpu.memory_space<vmem>>, vector<8x256xbf16>
    %277 = arith.extf %276 : vector<8x256xbf16> to vector<8x256xf32>
    %cst_139 = arith.constant 0.000000e+00 : f32
    %278 = vector.shape_cast %29 : vector<1x256xi1> to vector<1x256xi1>
    %279 = vector.broadcast %278 : vector<1x256xi1> to vector<8x256xi1>
    %280 = vector.broadcast %cst_139 : f32 to vector<8x256xf32>
    %281 = arith.select %279, %277, %280 : vector<8x256xi1>, vector<8x256xf32>
    %282 = arith.addf %275, %281 : vector<8x256xf32>
    %cst_140 = arith.constant 0.000000e+00 : f32
    %283 = vector.broadcast %cst_140 : f32 to vector<8x256xf32>
    %284 = arith.cmpf oge, %282, %283 : vector<8x256xf32>
    %cst_141 = arith.constant 2.000000e-01 : f32
    %285 = vector.broadcast %cst_141 : f32 to vector<8x256xf32>
    %286 = arith.mulf %285, %282 : vector<8x256xf32>
    %287 = arith.select %284, %282, %286 : vector<8x256xi1>, vector<8x256xf32>
    %288 = arith.truncf %287 : vector<8x256xf32> to vector<8x256xbf16>
    %c32_142 = arith.constant 32 : index
    %c0_143 = arith.constant 0 : index
    %289 = vector.load %arg15[%c32_142, %c0_143] : memref<40x256xbf16, #tpu.memory_space<vmem>>, vector<8x256xbf16>
    tpu.vector_store %arg15[%c32_142, %c0_143], %288 {strides = array<i32>} : memref<40x256xbf16, #tpu.memory_space<vmem>>, vector<8x256xbf16>,
    %c0_144 = arith.constant 0 : index
    %c0_145 = arith.constant 0 : index
    %c0_146 = arith.constant 0 : index
    %290 = vector.load %arg12[%c0_144, %c0_145, %c0_146] : memref<1x4x1xf32, #tpu.memory_space<vmem>>, vector<1x4x1xf32>
    %291 = vector.shape_cast %290 : vector<1x4x1xf32> to vector<4x1xf32>
    %c0_147 = arith.constant 0 : index
    %c0_148 = arith.constant 0 : index
    %292 = vector.load %arg10[%c0_147, %c0_148] : memref<36x40xbf16, #tpu.memory_space<vmem>>, vector<36x40xbf16>
    %c0_149 = arith.constant 0 : index
    %c0_150 = arith.constant 0 : index
    %293 = vector.load %arg15[%c0_149, %c0_150] : memref<40x256xbf16, #tpu.memory_space<vmem>>, vector<40x256xbf16>
    %cst_151 = arith.constant dense<0.000000e+00> : vector<36x256xf32>
    %294 = tpu.matmul %292, %293, %cst_151 {dimension_numbers = #tpu.dot_dimension_numbers<[1], [0], [0], [1], [0, 0, 1, 1], [], []>} : vector<36x40xbf16>, vector<40x256xbf16>, vector<36x256xf32> -> vector<36x256xf32>
    %295 = arith.truncf %294 : vector<36x256xf32> to vector<36x256xbf16>
    %c0_152 = arith.constant 0 : index
    %c128_153 = arith.constant 128 : index
    %296 = vector.load %arg16[%c0_152, %c128_153] : memref<72x512xbf16, #tpu.memory_space<vmem>>, vector<36x256xbf16>
    tpu.vector_store %arg16[%c0_152, %c128_153], %295 {strides = array<i32>} : memref<72x512xbf16, #tpu.memory_space<vmem>>, vector<36x256xbf16>,
    %c16_154 = arith.constant 16 : index
    %c128_155 = arith.constant 128 : index
    %297 = vector.load %arg16[%c16_154, %c128_155] : memref<72x512xbf16, #tpu.memory_space<vmem>>, vector<4x256xbf16>
    %298 = arith.extf %297 : vector<4x256xbf16> to vector<4x256xf32>
    %299 = vector.broadcast %291 : vector<4x1xf32> to vector<4x256xf32>
    %300 = arith.addf %298, %299 : vector<4x256xf32>
    %c0_156 = arith.constant 0 : index
    %c111_157 = arith.constant 111 : index
    %301 = vector.load %arg16[%c0_156, %c111_157] : memref<72x512xbf16, #tpu.memory_space<vmem>>, vector<4x256xbf16>
    %302 = arith.extf %301 : vector<4x256xbf16> to vector<4x256xf32>
    %cst_158 = arith.constant 0.000000e+00 : f32
    %303 = vector.shape_cast %27 : vector<1x256xi1> to vector<1x256xi1>
    %304 = vector.broadcast %303 : vector<1x256xi1> to vector<4x256xi1>
    %305 = vector.broadcast %cst_158 : f32 to vector<4x256xf32>
    %306 = arith.select %304, %302, %305 : vector<4x256xi1>, vector<4x256xf32>
    %307 = arith.addf %300, %306 : vector<4x256xf32>
    %c4_159 = arith.constant 4 : index
    %c112_160 = arith.constant 112 : index
    %308 = vector.load %arg16[%c4_159, %c112_160] : memref<72x512xbf16, #tpu.memory_space<vmem>>, vector<4x256xbf16>
    %309 = arith.extf %308 : vector<4x256xbf16> to vector<4x256xf32>
    %310 = arith.addf %307, %309 : vector<4x256xf32>
    %c8_161 = arith.constant 8 : index
    %c113_162 = arith.constant 113 : index
    %311 = vector.load %arg16[%c8_161, %c113_162] : memref<72x512xbf16, #tpu.memory_space<vmem>>, vector<4x256xbf16>
    %312 = arith.extf %311 : vector<4x256xbf16> to vector<4x256xf32>
    %cst_163 = arith.constant 0.000000e+00 : f32
    %313 = vector.shape_cast %29 : vector<1x256xi1> to vector<1x256xi1>
    %314 = vector.broadcast %313 : vector<1x256xi1> to vector<4x256xi1>
    %315 = vector.broadcast %cst_163 : f32 to vector<4x256xf32>
    %316 = arith.select %314, %312, %315 : vector<4x256xi1>, vector<4x256xf32>
    %317 = arith.addf %310, %316 : vector<4x256xf32>
    %c12 = arith.constant 12 : index
    %c127_164 = arith.constant 127 : index
    %318 = vector.load %arg16[%c12, %c127_164] : memref<72x512xbf16, #tpu.memory_space<vmem>>, vector<4x256xbf16>
    %319 = arith.extf %318 : vector<4x256xbf16> to vector<4x256xf32>
    %cst_165 = arith.constant 0.000000e+00 : f32
    %320 = vector.shape_cast %27 : vector<1x256xi1> to vector<1x256xi1>
    %321 = vector.broadcast %320 : vector<1x256xi1> to vector<4x256xi1>
    %322 = vector.broadcast %cst_165 : f32 to vector<4x256xf32>
    %323 = arith.select %321, %319, %322 : vector<4x256xi1>, vector<4x256xf32>
    %324 = arith.addf %317, %323 : vector<4x256xf32>
    %c20 = arith.constant 20 : index
    %c129_166 = arith.constant 129 : index
    %325 = vector.load %arg16[%c20, %c129_166] : memref<72x512xbf16, #tpu.memory_space<vmem>>, vector<4x256xbf16>
    %326 = arith.extf %325 : vector<4x256xbf16> to vector<4x256xf32>
    %cst_167 = arith.constant 0.000000e+00 : f32
    %327 = vector.shape_cast %29 : vector<1x256xi1> to vector<1x256xi1>
    %328 = vector.broadcast %327 : vector<1x256xi1> to vector<4x256xi1>
    %329 = vector.broadcast %cst_167 : f32 to vector<4x256xf32>
    %330 = arith.select %328, %326, %329 : vector<4x256xi1>, vector<4x256xf32>
    %331 = arith.addf %324, %330 : vector<4x256xf32>
    %c24_168 = arith.constant 24 : index
    %c143_169 = arith.constant 143 : index
    %332 = vector.load %arg16[%c24_168, %c143_169] : memref<72x512xbf16, #tpu.memory_space<vmem>>, vector<4x256xbf16>
    %333 = arith.extf %332 : vector<4x256xbf16> to vector<4x256xf32>
    %cst_170 = arith.constant 0.000000e+00 : f32
    %334 = vector.shape_cast %27 : vector<1x256xi1> to vector<1x256xi1>
    %335 = vector.broadcast %334 : vector<1x256xi1> to vector<4x256xi1>
    %336 = vector.broadcast %cst_170 : f32 to vector<4x256xf32>
    %337 = arith.select %335, %333, %336 : vector<4x256xi1>, vector<4x256xf32>
    %338 = arith.addf %331, %337 : vector<4x256xf32>
    %c28 = arith.constant 28 : index
    %c144_171 = arith.constant 144 : index
    %339 = vector.load %arg16[%c28, %c144_171] : memref<72x512xbf16, #tpu.memory_space<vmem>>, vector<4x256xbf16>
    %340 = arith.extf %339 : vector<4x256xbf16> to vector<4x256xf32>
    %341 = arith.addf %338, %340 : vector<4x256xf32>
    %c32_172 = arith.constant 32 : index
    %c145_173 = arith.constant 145 : index
    %342 = vector.load %arg16[%c32_172, %c145_173] : memref<72x512xbf16, #tpu.memory_space<vmem>>, vector<4x256xbf16>
    %343 = arith.extf %342 : vector<4x256xbf16> to vector<4x256xf32>
    %cst_174 = arith.constant 0.000000e+00 : f32
    %344 = vector.shape_cast %29 : vector<1x256xi1> to vector<1x256xi1>
    %345 = vector.broadcast %344 : vector<1x256xi1> to vector<4x256xi1>
    %346 = vector.broadcast %cst_174 : f32 to vector<4x256xf32>
    %347 = arith.select %345, %343, %346 : vector<4x256xi1>, vector<4x256xf32>
    %348 = arith.addf %341, %347 : vector<4x256xf32>
    %c0_175 = arith.constant 0 : index
    %c0_176 = arith.constant 0 : index
    %c0_177 = arith.constant 0 : index
    %349 = vector.load %arg13[%c0_175, %c0_176, %c0_177] : memref<1x4x1xf32, #tpu.memory_space<vmem>>, vector<1x4x1xf32>
    %350 = vector.shape_cast %349 : vector<1x4x1xf32> to vector<4x1xf32>
    %c0_178 = arith.constant 0 : index
    %c0_179 = arith.constant 0 : index
    %351 = vector.load %arg11[%c0_178, %c0_179] : memref<36x40xbf16, #tpu.memory_space<vmem>>, vector<36x40xbf16>
    %c0_180 = arith.constant 0 : index
    %c0_181 = arith.constant 0 : index
    %352 = vector.load %arg15[%c0_180, %c0_181] : memref<40x256xbf16, #tpu.memory_space<vmem>>, vector<40x256xbf16>
    %cst_182 = arith.constant dense<0.000000e+00> : vector<36x256xf32>
    %353 = tpu.matmul %351, %352, %cst_182 {dimension_numbers = #tpu.dot_dimension_numbers<[1], [0], [0], [1], [0, 0, 1, 1], [], []>} : vector<36x40xbf16>, vector<40x256xbf16>, vector<36x256xf32> -> vector<36x256xf32>
    %354 = arith.truncf %353 : vector<36x256xf32> to vector<36x256xbf16>
    %c0_183 = arith.constant 0 : index
    %c128_184 = arith.constant 128 : index
    %355 = vector.load %arg16[%c0_183, %c128_184] : memref<72x512xbf16, #tpu.memory_space<vmem>>, vector<36x256xbf16>
    tpu.vector_store %arg16[%c0_183, %c128_184], %354 {strides = array<i32>} : memref<72x512xbf16, #tpu.memory_space<vmem>>, vector<36x256xbf16>,
    %c16_185 = arith.constant 16 : index
    %c128_186 = arith.constant 128 : index
    %356 = vector.load %arg16[%c16_185, %c128_186] : memref<72x512xbf16, #tpu.memory_space<vmem>>, vector<4x256xbf16>
    %357 = arith.extf %356 : vector<4x256xbf16> to vector<4x256xf32>
    %358 = vector.broadcast %350 : vector<4x1xf32> to vector<4x256xf32>
    %359 = arith.addf %357, %358 : vector<4x256xf32>
    %c0_187 = arith.constant 0 : index
    %c111_188 = arith.constant 111 : index
    %360 = vector.load %arg16[%c0_187, %c111_188] : memref<72x512xbf16, #tpu.memory_space<vmem>>, vector<4x256xbf16>
    %361 = arith.extf %360 : vector<4x256xbf16> to vector<4x256xf32>
    %cst_189 = arith.constant 0.000000e+00 : f32
    %362 = vector.shape_cast %27 : vector<1x256xi1> to vector<1x256xi1>
    %363 = vector.broadcast %362 : vector<1x256xi1> to vector<4x256xi1>
    %364 = vector.broadcast %cst_189 : f32 to vector<4x256xf32>
    %365 = arith.select %363, %361, %364 : vector<4x256xi1>, vector<4x256xf32>
    %366 = arith.addf %359, %365 : vector<4x256xf32>
    %c4_190 = arith.constant 4 : index
    %c112_191 = arith.constant 112 : index
    %367 = vector.load %arg16[%c4_190, %c112_191] : memref<72x512xbf16, #tpu.memory_space<vmem>>, vector<4x256xbf16>
    %368 = arith.extf %367 : vector<4x256xbf16> to vector<4x256xf32>
    %369 = arith.addf %366, %368 : vector<4x256xf32>
    %c8_192 = arith.constant 8 : index
    %c113_193 = arith.constant 113 : index
    %370 = vector.load %arg16[%c8_192, %c113_193] : memref<72x512xbf16, #tpu.memory_space<vmem>>, vector<4x256xbf16>
    %371 = arith.extf %370 : vector<4x256xbf16> to vector<4x256xf32>
    %cst_194 = arith.constant 0.000000e+00 : f32
    %372 = vector.shape_cast %29 : vector<1x256xi1> to vector<1x256xi1>
    %373 = vector.broadcast %372 : vector<1x256xi1> to vector<4x256xi1>
    %374 = vector.broadcast %cst_194 : f32 to vector<4x256xf32>
    %375 = arith.select %373, %371, %374 : vector<4x256xi1>, vector<4x256xf32>
    %376 = arith.addf %369, %375 : vector<4x256xf32>
    %c12_195 = arith.constant 12 : index
    %c127_196 = arith.constant 127 : index
    %377 = vector.load %arg16[%c12_195, %c127_196] : memref<72x512xbf16, #tpu.memory_space<vmem>>, vector<4x256xbf16>
    %378 = arith.extf %377 : vector<4x256xbf16> to vector<4x256xf32>
    %cst_197 = arith.constant 0.000000e+00 : f32
    %379 = vector.shape_cast %27 : vector<1x256xi1> to vector<1x256xi1>
    %380 = vector.broadcast %379 : vector<1x256xi1> to vector<4x256xi1>
    %381 = vector.broadcast %cst_197 : f32 to vector<4x256xf32>
    %382 = arith.select %380, %378, %381 : vector<4x256xi1>, vector<4x256xf32>
    %383 = arith.addf %376, %382 : vector<4x256xf32>
    %c20_198 = arith.constant 20 : index
    %c129_199 = arith.constant 129 : index
    %384 = vector.load %arg16[%c20_198, %c129_199] : memref<72x512xbf16, #tpu.memory_space<vmem>>, vector<4x256xbf16>
    %385 = arith.extf %384 : vector<4x256xbf16> to vector<4x256xf32>
    %cst_200 = arith.constant 0.000000e+00 : f32
    %386 = vector.shape_cast %29 : vector<1x256xi1> to vector<1x256xi1>
    %387 = vector.broadcast %386 : vector<1x256xi1> to vector<4x256xi1>
    %388 = vector.broadcast %cst_200 : f32 to vector<4x256xf32>
    %389 = arith.select %387, %385, %388 : vector<4x256xi1>, vector<4x256xf32>
    %390 = arith.addf %383, %389 : vector<4x256xf32>
    %c24_201 = arith.constant 24 : index
    %c143_202 = arith.constant 143 : index
    %391 = vector.load %arg16[%c24_201, %c143_202] : memref<72x512xbf16, #tpu.memory_space<vmem>>, vector<4x256xbf16>
    %392 = arith.extf %391 : vector<4x256xbf16> to vector<4x256xf32>
    %cst_203 = arith.constant 0.000000e+00 : f32
    %393 = vector.shape_cast %27 : vector<1x256xi1> to vector<1x256xi1>
    %394 = vector.broadcast %393 : vector<1x256xi1> to vector<4x256xi1>
    %395 = vector.broadcast %cst_203 : f32 to vector<4x256xf32>
    %396 = arith.select %394, %392, %395 : vector<4x256xi1>, vector<4x256xf32>
    %397 = arith.addf %390, %396 : vector<4x256xf32>
    %c28_204 = arith.constant 28 : index
    %c144_205 = arith.constant 144 : index
    %398 = vector.load %arg16[%c28_204, %c144_205] : memref<72x512xbf16, #tpu.memory_space<vmem>>, vector<4x256xbf16>
    %399 = arith.extf %398 : vector<4x256xbf16> to vector<4x256xf32>
    %400 = arith.addf %397, %399 : vector<4x256xf32>
    %c32_206 = arith.constant 32 : index
    %c145_207 = arith.constant 145 : index
    %401 = vector.load %arg16[%c32_206, %c145_207] : memref<72x512xbf16, #tpu.memory_space<vmem>>, vector<4x256xbf16>
    %402 = arith.extf %401 : vector<4x256xbf16> to vector<4x256xf32>
    %cst_208 = arith.constant 0.000000e+00 : f32
    %403 = vector.shape_cast %29 : vector<1x256xi1> to vector<1x256xi1>
    %404 = vector.broadcast %403 : vector<1x256xi1> to vector<4x256xi1>
    %405 = vector.broadcast %cst_208 : f32 to vector<4x256xf32>
    %406 = arith.select %404, %402, %405 : vector<4x256xi1>, vector<4x256xf32>
    %407 = arith.addf %400, %406 : vector<4x256xf32>
    %408 = math.tanh %348 : vector<4x256xf32>
    %409 = arith.negf %407 : vector<4x256xf32>
    %410 = math.exp %409 : vector<4x256xf32>
    %cst_209 = arith.constant 1.000000e+00 : f32
    %411 = vector.broadcast %cst_209 : f32 to vector<4x256xf32>
    %412 = arith.addf %411, %410 : vector<4x256xf32>
    %413 = arith.divf %411, %412 : vector<4x256xf32>
    %414 = arith.mulf %408, %413 : vector<4x256xf32>
    %cst_210 = arith.constant 2.000000e-01 : f32
    %415 = vector.broadcast %cst_210 : f32 to vector<4x256xf32>
    %416 = arith.mulf %414, %415 : vector<4x256xf32>
    %c0_211 = arith.constant 0 : index
    %c0_212 = arith.constant 0 : index
    %c0_213 = arith.constant 0 : index
    %417 = vector.load %arg1[%c0_211, %c0_212, %c0_213] : memref<1x4x256xf32, #tpu.memory_space<vmem>>, vector<1x4x256xf32>
    %418 = vector.shape_cast %417 : vector<1x4x256xf32> to vector<4x256xf32>
    %419 = arith.addf %416, %418 : vector<4x256xf32>
    %c0_214 = arith.constant 0 : index
    %c0_215 = arith.constant 0 : index
    %c0_216 = arith.constant 0 : index
    %420 = vector.load %arg14[%c0_214, %c0_215, %c0_216] : memref<1x4x256xf32, #tpu.memory_space<vmem>>, vector<1x4x256xf32>
    %421 = vector.shape_cast %420 : vector<1x4x256xf32> to vector<4x256xf32>
    %422 = vector.shape_cast %419 : vector<4x256xf32> to vector<1x4x256xf32>
    tpu.vector_store %arg14[%c0_214, %c0_215, %c0_216], %422 {strides = array<i32>} : memref<1x4x256xf32, #tpu.memory_space<vmem>>, vector<1x4x256xf32>,
    return
  }
  func.func @transform_0(%arg0: i32) -> (i32, i32, i32) {
    %c0_i32 = arith.constant 0 : i32
    %c0_i32_0 = arith.constant 0 : i32
    %c0_i32_1 = arith.constant 0 : i32
    return %arg0, %c0_i32, %c0_i32_0 : i32, i32, i32
  }
  func.func @transform_1(%arg0: i32) -> (i32, i32) {
    %c0_i32 = arith.constant 0 : i32
    %c0_i32_0 = arith.constant 0 : i32
    %c0_i32_1 = arith.constant 0 : i32
    return %c0_i32, %c0_i32_0 : i32, i32
  }
  func.func @transform_2(%arg0: i32) -> (i32, i32) {
    %c0_i32 = arith.constant 0 : i32
    %c0_i32_0 = arith.constant 0 : i32
    %c0_i32_1 = arith.constant 0 : i32
    return %c0_i32, %c0_i32_0 : i32, i32
  }
  func.func @transform_3(%arg0: i32) -> (i32, i32) {
    %c0_i32 = arith.constant 0 : i32
    %c0_i32_0 = arith.constant 0 : i32
    %c0_i32_1 = arith.constant 0 : i32
    return %c0_i32, %c0_i32_0 : i32, i32
  }
  func.func @transform_4(%arg0: i32) -> (i32, i32) {
    %c0_i32 = arith.constant 0 : i32
    %c0_i32_0 = arith.constant 0 : i32
    %c0_i32_1 = arith.constant 0 : i32
    return %c0_i32, %c0_i32_0 : i32, i32
  }
  func.func @transform_5(%arg0: i32) -> (i32, i32) {
    %c0_i32 = arith.constant 0 : i32
    %c0_i32_0 = arith.constant 0 : i32
    %c0_i32_1 = arith.constant 0 : i32
    return %c0_i32, %c0_i32_0 : i32, i32
  }
  func.func @transform_6(%arg0: i32) -> (i32, i32) {
    %c0_i32 = arith.constant 0 : i32
    %c0_i32_0 = arith.constant 0 : i32
    %c0_i32_1 = arith.constant 0 : i32
    return %c0_i32, %c0_i32_0 : i32, i32
  }
  func.func @transform_7(%arg0: i32) -> (i32, i32) {
    %c0_i32 = arith.constant 0 : i32
    %c0_i32_0 = arith.constant 0 : i32
    %c0_i32_1 = arith.constant 0 : i32
    return %c0_i32, %c0_i32_0 : i32, i32
  }
  func.func @transform_8(%arg0: i32) -> (i32, i32) {
    %c0_i32 = arith.constant 0 : i32
    %c0_i32_0 = arith.constant 0 : i32
    %c0_i32_1 = arith.constant 0 : i32
    return %c0_i32, %c0_i32_0 : i32, i32
  }
  func.func @transform_9(%arg0: i32) -> (i32, i32) {
    %c0_i32 = arith.constant 0 : i32
    %c0_i32_0 = arith.constant 0 : i32
    %c0_i32_1 = arith.constant 0 : i32
    return %c0_i32, %c0_i32_0 : i32, i32
  }
  func.func @transform_10(%arg0: i32) -> (i32, i32) {
    %c0_i32 = arith.constant 0 : i32
    %c0_i32_0 = arith.constant 0 : i32
    %c0_i32_1 = arith.constant 0 : i32
    return %c0_i32, %c0_i32_0 : i32, i32
  }
  func.func @transform_11(%arg0: i32) -> (i32, i32, i32) {
    %c0_i32 = arith.constant 0 : i32
    %c0_i32_0 = arith.constant 0 : i32
    %c0_i32_1 = arith.constant 0 : i32
    return %arg0, %c0_i32, %c0_i32_0 : i32, i32, i32
  }
  func.func @transform_12(%arg0: i32) -> (i32, i32, i32) {
    %c0_i32 = arith.constant 0 : i32
    %c0_i32_0 = arith.constant 0 : i32
    %c0_i32_1 = arith.constant 0 : i32
    return %arg0, %c0_i32, %c0_i32_0 : i32, i32, i32
  }
  func.func @transform_13(%arg0: i32) -> (i32, i32, i32) {
    %c0_i32 = arith.constant 0 : i32
    %c0_i32_0 = arith.constant 0 : i32
    %c0_i32_1 = arith.constant 0 : i32
    return %arg0, %c0_i32, %c0_i32_0 : i32, i32, i32
  }
}

</mosaic_0001>

<bundles_post_ra>
// kernel: residual_dense_block.1
= control target key start
LH: loop header
LB: loop body
LE: loop exit
PB: predicated region body
PF: predicated region fallthrough
CT: control target
= control target key end

     0   :  { %s3631_s25 = smov 0   ;;  %s4296_s0 = inlined_call_operand.vmem [shape: f32[2,4,256], index: 0, kind: input, shape index: {}]   ;;  %s4297_s1 = inlined_call_operand.vmem [shape: bf16[72,8], index: 1, kind: input, shape index: {}]   ;;  %s4298_s2 = inlined_call_operand.vmem [shape: f32[8,1], index: 2, kind: input, shape index: {}]   ;;  %s4299_s3 = inlined_call_operand.vmem [shape: bf16[72,16], index: 3, kind: input, shape index: {}]   ;;  %s4300_s4 = inlined_call_operand.vmem [shape: f32[8,1], index: 4, kind: input, shape index: {}]   ;;  %s4301_s5 = inlined_call_operand.vmem [shape: bf16[72,24], index: 5, kind: input, shape index: {}]   ;;  %s4302_s6 = inlined_call_operand.vmem [shape: f32[8,1], index: 6, kind: input, shape index: {}]   ;;  %s4303_s7 = inlined_call_operand.vmem [shape: bf16[72,32], index: 7, kind: input, shape index: {}]   ;;  %s4304_s8 = inlined_call_operand.vmem [shape: f32[8,1], index: 8, kind: input, shape index: {}]   ;;  %s4305_s9 = inlined_call_operand.vmem [shape: bf16[36,40], index: 9, kind: input, shape index: {}]   ;;  %s4306_s10 = inlined_call_operand.vmem [shape: bf16[36,40], index: 10, kind: input, shape index: {}]   ;;  %s4307_s11 = inlined_call_operand.vmem [shape: f32[2,4,1], index: 11, kind: input, shape index: {}]   ;;  %s4308_s12 = inlined_call_operand.vmem [shape: f32[2,4,1], index: 12, kind: input, shape index: {}]   ;;  %s4309_s13 = inlined_call_operand.vmem [shape: f32[2,4,256], index: 13, kind: output, shape index: {}]  }
   0x1 LB: > { %s3016_s26 = sadd.s32 4294967295, %s3550_s25   ;;  %p3020_p0 = scmp.ge.s32.totalorder %s3550_s25, 1  ;;  %s3550_s25 = sphi %s3631_s25, %s23_s25  }
   0x2   : > { %p405_p1 = scmp.lt.s32.totalorder %s3550_s25, 3 }
   0x4   : > { %p406_p2 = pnand %p3020_p0, %p405_p1 }
   0x5   : > { %p3639_p3 = scmp.lt.s32.totalorder (!%p406_p2), %s3016_s26, 1  ;;  %s3553_s30 = smov (!%p406_p2), 127  }
   0x6   : > { %409 = sbr.rel (%p406_p2) target bundleno = 1927 (0x787), region = 72  ;;  %s3554_s15 = smov (!%p406_p2), 113  }
   0x7   : > { %s3555_s16 = smov (!%p406_p2), 17   ;;  %s3556_s17 = smov (!%p406_p2), 16  }
   0x8   : > { %s4317_s18 = smov (!%p406_p2), 15   ;;  %s4315_s19 = smov (!%p406_p2), 1  }
   0x9   : > { %s4313_s20 = smov (!%p406_p2), 112   ;;  %s4311_s21 = smov (!%p406_p2), 111  }
   0xa   : > { %s4329_s29 = smov (!%p406_p2), 112  }
   0xb   : > { %v3552_v0 = vmov 0   ;;  %s4334_s26 = smov (!%p3639_p3, %s3016_s26), 1  ;;  %v539_v1 = vld [vmem:[%s4298_s2] sm:$0xff]  ;;  %vm594_vm0 = vcmask 1043456   ;;  %vm578_vm1 = vcmask 64512   ;;  %v3498_v10 = vld [vmem:[%s4297_s1 + $0x8] sm:$0xff]  }
   0xc   : > { %489 = vst [vmem:[#allocation2 + $0x8] sm:$0xcc] %v3552_v0  ;;  %490 = vst [vmem:[#allocation3] sm:$0xf] %v3552_v0  ;;  %633 = vmatprep.mubr.bf16.mxu0 %v3552_v0  ;;  %3232 = vset.pattern.permute.xlu0 %v3552_v0  ;;  %s4310_s28 = sshll.u32 %s4334_s26, 3  ;;  %v3497_v9 = vld [vmem:[%s4297_s1] sm:$0xff]  }
   0xd   : > { %491 = vst [vmem:[#allocation3 + $0x10] sm:$0xf] %v3552_v0  ;;  %492 = vst [vmem:[#allocation3 + $0x20] sm:$0xf] %v3552_v0  ;;  %1052 = vmatprep.mubr.bf16.mxu1 %v3552_v0  ;;  %3273 = vset.pattern.permute.xlu1 %v3552_v0  ;;  %s3669_s14 = scalar_lea.vmem %s4296_s0, %s4310_s28  ;;  %v3499_v11 = vld [vmem:[%s4297_s1 + $0x10] sm:$0xff]   ;;  %v3500_v12 = vld [vmem:[%s4297_s1 + $0x18] sm:$0xff]  }
   0xe   : > { %493 = vst [vmem:[#allocation3 + $0x30] sm:$0xf] %v3552_v0  ;;  %501 = vst [vmem:[#allocation3 + $0x2c] sm:$0xf] %v3552_v0  ;;  %v476_v2 = vld [vmem:[%s3669_s14] sm:$0xff]  ;;  %752 = vperm.xlu0 %3232, %v539_v1   ;;  %vm775_vm2 = vcmask 138240  }
   0xf   : > { %502 = vst [vmem:[#allocation3 + $0x3c] sm:$0xf] %v3552_v0  ;;  %503 = vst [vmem:[#allocation3 + $0x4c] sm:$0xf] %v3552_v0  ;;  %v478_v3 = vcombine.high %v476_v2, %v476_v2  ;;  %v3501_v13 = vld [vmem:[%s4297_s1 + $0x20] ss:$0 sps:$4 sm:$0xff]  }
  0x10   : > { %504 = vst [vmem:[#allocation3 + $0x5c] sm:$0xf] %v3552_v0  ;;  %505 = vst [vmem:[#allocation3 + $0x6c] sm:$0xf] %v3552_v0  ;;  %vm798_vm5 = vcmask 130048   ;;  %vm823_vm6 = vcmask 121856  }
  0x11   : > { %506 = vst [vmem:[#allocation3 + $0x7c] sm:$0xf] %v3552_v0  ;;  %507 = vst [vmem:[#allocation3 + $0x8c] sm:$0xf] %v3552_v0  ;;  %v3164_v4 = vpack.c.bf16 %v478_v3, %v476_v2  ;;  %vm846_vm8 = vcmask 7168   ;;  %vm869_vm10 = vcmask 1039360  }
  0x12   : > { %vm892_vm11 = vcmask 924672   ;;  %vm915_vm12 = vcmask 916480   ;;  %vm936_vm13 = vcmask 908288  }
  0x13   : > { %488 = vst [vmem:[#allocation2 + $0x8] sm:$0x33] %v3164_v4 }
  0x17   : > { %v856_v14 = vld [vmem:[#allocation3 + $0x5c] ss:$16 sps:$4 sm:$0xff]  }
  0x18   : > { %v859_v15 = vunpack.c.l.bf16 %v856_v14  ;;  %v882_v16 = vunpack.c.h.bf16 %v856_v14  ;;  %v902_v58 = vld [vmem:[#allocation3 + $0x7c] ss:$16 sps:$4 sm:$0xff]  }
  0x19   : > { %v905_v61 = vunpack.c.l.bf16 %v902_v58  ;;  %v926_v2 = vunpack.c.h.bf16 %v902_v58 }
  0x1a   : > { %v3675_v5 = vld [vmem:[#allocation2 + $0x8] sm:$0xff]  ;;  %867 = vrot.lane.b32.xlu0 %v859_v15, %s3553_s30 }
  0x1b   : > { %v3034_v6 = vcombine.high %v3675_v5, %v3675_v5  ;;  %v3033_v7 = vcombine.low %v3675_v5, %v3675_v5 }
  0x1d   : > { %3035 = vmatprep.subr.msk.bf16.mxu0 %vm594_vm0, %v3034_v6  ;;  %v596_v8 = vsel %vm594_vm0, %v3033_v7, 0 }
  0x1e   : > { %616 = vmatpush1.bf16.msra.mxu0 %v596_v8  ;;  %890 = vrot.lane.b32.xlu0 %v882_v16, %s3554_s15 }
  0x21   : > { %3036 = vmatmul.mubr.msk.bf16.vlgmr.msra.gmra.mxu0 %vm578_vm1, %v3497_v9  ;;  %v960_v9 = vld [vmem:[%s4300_s4] sm:$0xff] }
  0x22   : > { %643 = vmatprep.mubr.bf16.mxu0 %v3552_v0 }
  0x29   : > { %3037 = vmatmul.mubr.msk.bf16.gmra.mxu0 %vm578_vm1, %v3498_v10 }
  0x2a   : > { %653 = vmatprep.mubr.bf16.mxu0 %v3552_v0 }
  0x31   : > { %3038 = vmatmul.mubr.msk.bf16.gmra.mxu0 %vm578_vm1, %v3499_v11 }
  0x32   : > { %663 = vmatprep.mubr.bf16.mxu0 %v3552_v0 }
  0x39   : > { %3039 = vmatmul.mubr.msk.bf16.gmra.mxu0 %vm578_vm1, %v3500_v12  ;;  %v508_v12 = vlaneseq }
  0x3a   : > { %673 = vmatprep.mubr.bf16.mxu0 %v3552_v0 }
  0x3b   : > { %v509_v14 = vand.u32 127, %v508_v12 }
  0x41   : > { %3040 = vmatmul.mubr.msk.bf16.gmra.mxu0 %vm578_vm1, %v3501_v13 }
  0x42   : > { %1468 = vmatprep.mubr.bf16.mxu0 %v3552_v0 }
  0x89   : > { %v753_v10 = vpop.permute.xlu0 %752 }
  0x8d   : > { %v868_v11 = vpop.permute.xlu0 %867 }
  0x91   : > { %v3724_v13 = vpop.permute.xlu0 %890 }
  0xe1   : > { %v635_v17 = vpop.f32.mrf.mxu0 }
  0xe3   : > { %v637_v18 = vpop.f32.mrf.mxu0 }
  0xe4   : > { %v3165_v19 = vpack.c.bf16 %v637_v18, %v635_v17  ;;  %v510_v17 = vadd.s32 128, %v509_v14 }
  0xe5   : > { %v639_v20 = vpop.f32.mrf.mxu0 }
  0xe6   : > { %738 = vst [vmem:[#allocation3 + $0x4] sm:$0xff] %v3165_v19  ;;  %v515_v19 = vand.u32 15, %v509_v14 }
  0xe7   : > { %v641_v21 = vpop.f32.mrf.mxu0 }
  0xe8   : > { %v3166_v22 = vpack.c.bf16 %v641_v21, %v639_v20  ;;  %v522_v20 = vand.u32 15, %v510_v17  ;;  %vm3726_vm3 = vcmp.ge.s32.totalorder %v515_v19, 1  ;;  %vm3742_vm7 = vcmp.le.s32.totalorder %v515_v19, 14 }
  0xe9   : > { %v645_v23 = vpop.f32.mrf.mxu0 }
  0xea   : > { %739 = vst [vmem:[#allocation3 + $0x14] sm:$0xff] %v3166_v22  ;;  %vm3730_vm4 = vcmp.ge.s32.totalorder %v522_v20, 1  ;;  %vm3746_vm9 = vcmp.le.s32.totalorder %v522_v20, 14 }
  0xeb   : > { %v647_v24 = vpop.f32.mrf.mxu0 }
  0xec   : > { %v3167_v25 = vpack.c.bf16 %v647_v24, %v645_v23 }
  0xed   : > { %v649_v26 = vpop.f32.mrf.mxu0  ;;  %v757_v27 = vld [vmem:[#allocation3] sm:$0xff] }
  0xee   : > { %740 = vst [vmem:[#allocation3 + $0x24] sm:$0xff] %v3167_v25  ;;  %v759_v28 = vunpack.c.l.bf16 %v757_v27  ;;  %v760_v29 = vunpack.c.h.bf16 %v757_v27 }
  0xef   : > { %v651_v30 = vpop.f32.mrf.mxu0 }
  0xf0   : > { %v3168_v31 = vpack.c.bf16 %v651_v30, %v649_v26  ;;  %v3233_v32 = vpack.i.bf16 %v760_v29, %v759_v28 }
  0xf1   : > { %v758_v33 = vld [vmem:[#allocation3 + $0x8] ss:$16 sps:$4 sm:$0xff]   ;;  %v655_v34 = vpop.f32.mrf.mxu0  ;;  %v784_v35 = vld [vmem:[#allocation3 + $0x10] sm:$0xff] }
  0xf2   : > { %741 = vst [vmem:[#allocation3 + $0x34] sm:$0xff] %v3168_v31  ;;  %v761_v36 = vunpack.c.l.bf16 %v758_v33  ;;  %3234 = vrot.lane.b32.xlu0 %v3233_v32, %s3555_s16  ;;  %v786_v37 = vunpack.c.l.bf16 %v784_v35  ;;  %v787_v38 = vunpack.c.h.bf16 %v784_v35  ;;  %v788_v41 = vunpack.c.h.bf16 %v758_v33 }
  0xf3   : > { %v657_v39 = vpop.f32.mrf.mxu0 }
  0xf4   : > { %773 = vrot.lane.b32.xlu1 %v761_v36, %s3555_s16  ;;  %v3707_v40 = vpack.c.bf16 %v657_v39, %v655_v34  ;;  %v3238_v44 = vpack.i.bf16 %v787_v38, %v786_v37 }
  0xf5   : > { %v659_v42 = vpop.f32.mrf.mxu0  ;;  %v805_v43 = vld [vmem:[#allocation3 + $0x20] sm:$0xff] }
  0xf6   : > { %796 = vrot.lane.b32.xlu0 %v788_v41, %s3556_s17  ;;  %v807_v45 = vunpack.c.l.bf16 %v805_v43  ;;  %v808_v46 = vunpack.c.h.bf16 %v805_v43  ;;  %v748_v27 = vunpack.c.l.bf16 %v3707_v40  ;;  %v749_v28 = vunpack.c.h.bf16 %v3707_v40 }
  0xf7   : > { %v661_v47 = vpop.f32.mrf.mxu0 }
  0xf8   : > { %3239 = vrot.lane.b32.xlu1 %v3238_v44, %s3556_s17  ;;  %v3243_v52 = vpack.i.bf16 %v808_v46, %v807_v45  ;;  %v3253_v63 = vpack.i.bf16 %v661_v47, %v659_v42  ;;  %v755_v41 = vadd.f32 %v753_v10, %v748_v27  ;;  %v756_v42 = vadd.f32 %v753_v10, %v749_v28 }
  0xf9   : > { %v665_v48 = vpop.f32.mrf.mxu0  ;;  %v806_v49 = vld [vmem:[#allocation3 + $0x28] ss:$16 sps:$4 sm:$0xff]   ;;  %v832_v50 = vld [vmem:[#allocation3 + $0x30] sm:$0xff] }
  0xfa   : > { %v809_v51 = vunpack.c.l.bf16 %v806_v49  ;;  %v834_v53 = vunpack.c.l.bf16 %v832_v50  ;;  %v835_v54 = vunpack.c.h.bf16 %v832_v50  ;;  %v836_v57 = vunpack.c.h.bf16 %v806_v49 }
  0xfb   : > { %v667_v55 = vpop.f32.mrf.mxu0 }
  0xfc   : > { %821 = vrot.lane.b32.xlu0 %v809_v51, %s4317_s18  ;;  %3244 = vrot.lane.b32.xlu1 %v3243_v52, %s4317_s18  ;;  %v3248_v59 = vpack.i.bf16 %v835_v54, %v834_v53  ;;  %v3258_v4 = vpack.i.bf16 %v667_v55, %v665_v48 }
  0xfd   : > { %v669_v56 = vpop.f32.mrf.mxu0 }
  0xff   : > { %v671_v60 = vpop.f32.mrf.mxu0 }
 0x100   : > { %844 = vrot.lane.b32.xlu0 %v836_v57, %s4315_s19  ;;  %3249 = vrot.lane.b32.xlu1 %v3248_v59, %s4315_s19  ;;  %v3263_v7 = vpack.i.bf16 %v671_v60, %v669_v56 }
 0x101   : > { %v675_v62 = vpop.f32.mrf.mxu0 }
 0x103   : > { %v677_v1 = vpop.f32.mrf.mxu0 }
 0x104   : > { %3254 = vrot.lane.b32.xlu1 %v3253_v63, %s3553_s30  ;;  %913 = vrot.lane.b32.xlu0 %v905_v61, %s4313_s20  ;;  %v3268_v8 = vpack.i.bf16 %v677_v1, %v675_v62 }
 0x105   : > { %v679_v3 = vpop.f32.mrf.mxu0 }
 0x107   : > { %v680_v6 = vpop.f32.mrf.mxu0 }
 0x108   : > { %3259 = vrot.lane.b32.xlu1 %v3258_v4, %s3554_s15  ;;  %934 = vrot.lane.b32.xlu0 %v926_v2, %s4311_s21 }
 0x10c   : > { %3264 = vrot.lane.b32.xlu1 %v3263_v7, %s4313_s20 }
 0x110   : > { %3269 = vrot.lane.b32.xlu1 %v3268_v8, %s4311_s21 }
 0x114   : > { %1171 = vperm.xlu1 %3273, %v960_v9  }
 0x164   : > { %v3235_v16 = vpop.permute.xlu0 %3234 }
 0x165   : > { %v3237_v21 = vunpack.i.h.bf16 %v3235_v16  ;;  %v3236_v22 = vunpack.i.l.bf16 %v3235_v16 }
 0x166   : > { %v774_v15 = vpop.permute.xlu1 %773 }
 0x167   : > { %v777_v29 = vsel %vm775_vm2, %v3237_v21, %v774_v15  ;;  %v776_v30 = vsel %vm775_vm2, %v3236_v22, %v3237_v21 }
 0x168   : > { %v797_v23 = vpop.permute.xlu0 %796  ;;  %v781_v37 = vsel %vm3730_vm4, %v777_v29, 0.0  ;;  %v780_v38 = vsel %vm3726_vm3, %v776_v30, 0.0 }
 0x169   : > { %v782_v47 = vadd.f32 %v780_v38, %v755_v41  ;;  %v783_v48 = vadd.f32 %v781_v37, %v756_v42 }
 0x16a   : > { %v3240_v18 = vpop.permute.xlu1 %3239 }
 0x16b   : > { %v3242_v34 = vunpack.i.h.bf16 %v3240_v18  ;;  %v3241_v35 = vunpack.i.l.bf16 %v3240_v18 }
 0x16d   : > { %v800_v49 = vsel %vm798_vm5, %v3242_v34, %v797_v23  ;;  %v799_v50 = vsel %vm798_vm5, %v3241_v35, %v3242_v34 }
 0x16e   : > { %v3245_v24 = vpop.permute.xlu1 %3244  ;;  %v822_v31 = vpop.permute.xlu0 %821  ;;  %v803_v59 = vadd.f32 %v799_v50, %v782_v47  ;;  %v804_v60 = vadd.f32 %v800_v49, %v783_v48  ;;  %v3502_v49 = vld [vmem:[%s4299_s3] sm:$0xff]   ;;  %v3503_v50 = vld [vmem:[%s4299_s3 + $0x8] sm:$0xff]  }
 0x16f   : > { %v3247_v32 = vunpack.i.h.bf16 %v3245_v24  ;;  %v3246_v33 = vunpack.i.l.bf16 %v3245_v24 }
 0x171   : > { %v825_v45 = vsel %vm823_vm6, %v3247_v32, %v822_v31  ;;  %v824_v46 = vsel %vm823_vm6, %v3246_v33, %v3247_v32 }
 0x172   : > { %v3250_v36 = vpop.permute.xlu1 %3249  ;;  %v845_v51 = vpop.permute.xlu0 %844  ;;  %v829_v57 = vsel %vm3746_vm9, %v825_v45, 0.0  ;;  %v828_v58 = vsel %vm3742_vm7, %v824_v46, 0.0 }
 0x173   : > { %v3252_v39 = vunpack.i.h.bf16 %v3250_v36  ;;  %v3251_v40 = vunpack.i.l.bf16 %v3250_v36  ;;  %v830_v3 = vadd.f32 %v828_v58, %v803_v59  ;;  %v831_v4 = vadd.f32 %v829_v57, %v804_v60 }
 0x175   : > { %v848_v53 = vsel %vm846_vm8, %v3252_v39, %v845_v51  ;;  %v847_v54 = vsel %vm846_vm8, %v3251_v40, %v3252_v39  ;;  %v3505_v51 = vld [vmem:[%s4299_s3 + $0x18] sm:$0xff]  }
 0x176   : > { %v3255_v52 = vpop.permute.xlu1 %3254  ;;  %v852_v63 = vsel %vm3730_vm4, %v848_v53, 0.0  ;;  %v851_v1 = vsel %vm3726_vm3, %v847_v54, 0.0  ;;  %v914_v10 = vpop.permute.xlu0 %913  ;;  %v1263_v53 = vld [vmem:[#allocation3 + $0x5c] ss:$16 sps:$4 sm:$0xff]  }
 0x177   : > { %v3257_v55 = vunpack.i.h.bf16 %v3255_v52  ;;  %v3256_v56 = vunpack.i.l.bf16 %v3255_v52  ;;  %v854_v12 = vadd.f32 %v852_v63, %v831_v4  ;;  %v3506_v52 = vld [vmem:[%s4299_s3 + $0x20] ss:$0 sps:$4 sm:$0xff]   ;;  %v1266_v54 = vunpack.c.l.bf16 %v1263_v53 }
 0x179   : > { %v871_v61 = vsel %vm869_vm10, %v3257_v55, %v868_v11  ;;  %v870_v62 = vsel %vm869_vm10, %v3256_v56, %v3257_v55  ;;  %v853_v11 = vadd.f32 %v851_v1, %v830_v3  ;;  %1274 = vrot.lane.b32.xlu1 %v1266_v54, %s3553_s30  ;;  %v1288_v55 = vunpack.c.h.bf16 %v1263_v53  ;;  %v1363_v54 = vld [vmem:[%s4302_s6] sm:$0xff] }
 0x17a   : > { %v3260_v2 = vpop.permute.xlu1 %3259  ;;  %v875_v8 = vsel %vm3746_vm9, %v871_v61, 0.0  ;;  %v874_v9 = vsel %vm3742_vm7, %v870_v62, 0.0  ;;  %v935_v29 = vpop.permute.xlu0 %934 }
 0x17b   : > { %v3262_v6 = vunpack.i.h.bf16 %v3260_v2  ;;  %v3261_v7 = vunpack.i.l.bf16 %v3260_v2  ;;  %v876_v19 = vadd.f32 %v874_v9, %v853_v11  ;;  %v877_v22 = vadd.f32 %v875_v8, %v854_v12 }
 0x17d   : > { %v894_v14 = vsel %vm892_vm11, %v3262_v6, %v3724_v13  ;;  %v893_v15 = vsel %vm892_vm11, %v3261_v7, %v3262_v6  ;;  %1296 = vrot.lane.b32.xlu1 %v1288_v55, %s3554_s15 }
 0x17e   : > { %v897_v16 = vsel %vm3726_vm3, %v893_v15, 0.0  ;;  %v3265_v17 = vpop.permute.xlu1 %3264  ;;  %v898_v18 = vsel %vm3730_vm4, %v894_v14, 0.0 }
 0x17f   : > { %v3267_v20 = vunpack.i.h.bf16 %v3265_v17  ;;  %v3266_v21 = vunpack.i.l.bf16 %v3265_v17  ;;  %v899_v23 = vadd.f32 %v897_v16, %v876_v19  ;;  %v900_v24 = vadd.f32 %v898_v18, %v877_v22 }
 0x181   : > { %v916_v27 = vsel %vm915_vm12, %v3266_v21, %v3267_v20  ;;  %v917_v13 = vsel %vm915_vm12, %v3267_v20, %v914_v10 }
 0x182   : > { %v3270_v28 = vpop.permute.xlu1 %3269  ;;  %v920_v32 = vadd.f32 %v916_v27, %v899_v23  ;;  %v921_v33 = vadd.f32 %v917_v13, %v900_v24 }
 0x183   : > { %v3272_v30 = vunpack.i.h.bf16 %v3270_v28  ;;  %v3271_v31 = vunpack.i.l.bf16 %v3270_v28 }
 0x185   : > { %v937_v34 = vsel %vm936_vm13, %v3271_v31, %v3272_v30  ;;  %v938_v35 = vsel %vm936_vm13, %v3272_v30, %v935_v29 }
 0x186   : > { %v941_v36 = vsel %vm3742_vm7, %v937_v34, 0.0  ;;  %v942_v37 = vsel %vm3746_vm9, %v938_v35, 0.0 }
 0x187   : > { %v943_v38 = vadd.f32 %v941_v36, %v920_v32  ;;  %v944_v39 = vadd.f32 %v942_v37, %v921_v33  ;;  %v1307_v36 = vld [vmem:[#allocation3 + $0x7c] ss:$16 sps:$4 sm:$0xff]  }
 0x189   : > { %v947_v40 = vmul.f32 0.2, %v943_v38  ;;  %vm945_vm14 = vcmp.ge.f32.partialorder %v943_v38, 0.0  ;;  %vm946_vm15 = vcmp.ge.f32.partialorder %v944_v39, 0.0  ;;  %v948_v41 = vmul.f32 0.2, %v944_v39 }
 0x18b   : > { %v949_v42 = vsel %vm945_vm14, %v943_v38, %v947_v40  ;;  %v950_v45 = vsel %vm946_vm15, %v944_v39, %v948_v41  ;;  %v1310_v40 = vunpack.c.l.bf16 %v1307_v36  ;;  %vm1414_vm15 = vcmask 195584  }
 0x18c   : > { %v3785_v46 = vpack.c.bf16 %v950_v45, %v949_v42 }
 0x18e   : > { %959 = vst [vmem:[#allocation2] sm:$0xff] %v3785_v46  ;;  %v3790_v47 = vcombine.high %v3675_v5, %v3785_v46  ;;  %v3794_v48 = vcombine.low %v3675_v5, %v3785_v46  ;;  %v3504_v5 = vld [vmem:[%s4299_s3 + $0x10] sm:$0xff]  }
 0x18f   : > { %v1172_v55 = vpop.permute.xlu1 %1171 }
 0x190   : > { %1034 = vmatprep.subr.bf16.mxu1 %v3790_v47 }
 0x191   : > { %1035 = vmatpush1.bf16.msra.mxu1 %v3794_v48 }
 0x194   : > { %3058 = vmatmul.mubr.msk.bf16.vlgmr.msra.gmra.mxu1 %vm798_vm5, %v3502_v49  ;;  %v1330_v49 = vunpack.c.h.bf16 %v1307_v36 }
 0x195   : > { %1062 = vmatprep.mubr.bf16.mxu1 %v3552_v0 }
 0x19c   : > { %3059 = vmatmul.mubr.msk.bf16.gmra.mxu1 %vm798_vm5, %v3503_v50 }
 0x19d   : > { %1072 = vmatprep.mubr.bf16.mxu1 %v3552_v0 }
 0x1a4   : > { %3060 = vmatmul.mubr.msk.bf16.gmra.mxu1 %vm798_vm5, %v3504_v5 }
 0x1a5   : > { %1082 = vmatprep.mubr.bf16.mxu1 %v3552_v0 }
 0x1ac   : > { %3061 = vmatmul.mubr.msk.bf16.gmra.mxu1 %vm798_vm5, %v3505_v51 }
 0x1ad   : > { %1092 = vmatprep.mubr.bf16.mxu1 %v3552_v0 }
 0x1b4   : > { %3062 = vmatmul.mubr.msk.bf16.gmra.mxu1 %vm798_vm5, %v3506_v52 }
 0x1b5   : > { %1884 = vmatprep.mubr.bf16.mxu1 %v3552_v0 }
 0x254   : > { %v1054_v56 = vpop.f32.mrf.mxu1 }
 0x256   : > { %v1056_v57 = vpop.f32.mrf.mxu1 }
 0x257   : > { %v3175_v58 = vpack.c.bf16 %v1056_v57, %v1054_v56  ;;  %v1275_v56 = vpop.permute.xlu1 %1274 }
 0x258   : > { %v1058_v59 = vpop.f32.mrf.mxu1 }
 0x259   : > { %1157 = vst [vmem:[#allocation3 + $0x4] sm:$0xff] %v3175_v58 }
 0x25a   : > { %v1060_v60 = vpop.f32.mrf.mxu1 }
 0x25b   : > { %v3176_v61 = vpack.c.bf16 %v1060_v60, %v1058_v59  ;;  %v1297_v57 = vpop.permute.xlu1 %1296 }
 0x25c   : > { %v1064_v62 = vpop.f32.mrf.mxu1 }
 0x25d   : > { %1158 = vst [vmem:[#allocation3 + $0x14] sm:$0xff] %v3176_v61 }
 0x25e   : > { %v1066_v63 = vpop.f32.mrf.mxu1 }
 0x25f   : > { %v3177_v1 = vpack.c.bf16 %v1066_v63, %v1064_v62 }
 0x260   : > { %v1068_v2 = vpop.f32.mrf.mxu1  ;;  %v1176_v3 = vld [vmem:[#allocation3] sm:$0xff] }
 0x261   : > { %1159 = vst [vmem:[#allocation3 + $0x24] sm:$0xff] %v3177_v1  ;;  %v1178_v4 = vunpack.c.l.bf16 %v1176_v3  ;;  %v1179_v6 = vunpack.c.h.bf16 %v1176_v3 }
 0x262   : > { %v1070_v7 = vpop.f32.mrf.mxu1 }
 0x263   : > { %v3178_v8 = vpack.c.bf16 %v1070_v7, %v1068_v2  ;;  %v3274_v9 = vpack.i.bf16 %v1179_v6, %v1178_v4 }
 0x264   : > { %v1177_v10 = vld [vmem:[#allocation3 + $0x8] ss:$16 sps:$4 sm:$0xff]   ;;  %v1074_v11 = vpop.f32.mrf.mxu1  ;;  %v1198_v12 = vld [vmem:[#allocation3 + $0x10] sm:$0xff] }
 0x265   : > { %1160 = vst [vmem:[#allocation3 + $0x34] sm:$0xff] %v3178_v8  ;;  %v1180_v14 = vunpack.c.l.bf16 %v1177_v10  ;;  %3275 = vrot.lane.b32.xlu0 %v3274_v9, %s3555_s16  ;;  %v1200_v15 = vunpack.c.l.bf16 %v1198_v12  ;;  %v1201_v16 = vunpack.c.h.bf16 %v1198_v12  ;;  %v1202_v22 = vunpack.c.h.bf16 %v1177_v10 }
 0x266   : > { %v1076_v17 = vpop.f32.mrf.mxu1 }
 0x267   : > { %1188 = vrot.lane.b32.xlu1 %v1180_v14, %s3555_s16  ;;  %v3827_v18 = vpack.c.bf16 %v1076_v17, %v1074_v11  ;;  %v3279_v19 = vpack.i.bf16 %v1201_v16, %v1200_v15 }
 0x268   : > { %v1078_v20 = vpop.f32.mrf.mxu1  ;;  %v1218_v21 = vld [vmem:[#allocation3 + $0x20] sm:$0xff] }
 0x269   : > { %3280 = vrot.lane.b32.xlu0 %v3279_v19, %s3556_s17  ;;  %v1220_v23 = vunpack.c.l.bf16 %v1218_v21  ;;  %v1221_v24 = vunpack.c.h.bf16 %v1218_v21  ;;  %v1167_v2 = vunpack.c.l.bf16 %v3827_v18  ;;  %v1168_v3 = vunpack.c.h.bf16 %v3827_v18 }
 0x26a   : > { %v1080_v27 = vpop.f32.mrf.mxu1 }
 0x26b   : > { %1210 = vrot.lane.b32.xlu1 %v1202_v22, %s3556_s17  ;;  %v3284_v13 = vpack.i.bf16 %v1221_v24, %v1220_v23  ;;  %v3294_v41 = vpack.i.bf16 %v1080_v27, %v1078_v20  ;;  %v1174_v16 = vadd.f32 %v1172_v55, %v1167_v2  ;;  %v1175_v17 = vadd.f32 %v1172_v55, %v1168_v3 }
 0x26c   : > { %v1219_v28 = vld [vmem:[#allocation3 + $0x28] ss:$16 sps:$4 sm:$0xff]   ;;  %v1084_v29 = vpop.f32.mrf.mxu1  ;;  %v1240_v30 = vld [vmem:[#allocation3 + $0x30] sm:$0xff] }
 0x26d   : > { %v1222_v31 = vunpack.c.l.bf16 %v1219_v28  ;;  %3285 = vrot.lane.b32.xlu0 %v3284_v13, %s4317_s18  ;;  %v1242_v32 = vunpack.c.l.bf16 %v1240_v30  ;;  %v1243_v33 = vunpack.c.h.bf16 %v1240_v30  ;;  %v1244_v38 = vunpack.c.h.bf16 %v1219_v28 }
 0x26e   : > { %v1086_v34 = vpop.f32.mrf.mxu1 }
 0x26f   : > { %1230 = vrot.lane.b32.xlu1 %v1222_v31, %s4317_s18  ;;  %v3289_v35 = vpack.i.bf16 %v1243_v33, %v1242_v32  ;;  %v3299_v50 = vpack.i.bf16 %v1086_v34, %v1084_v29 }
 0x270   : > { %v1088_v37 = vpop.f32.mrf.mxu1 }
 0x271   : > { %3290 = vrot.lane.b32.xlu0 %v3289_v35, %s4315_s19 }
 0x272   : > { %v1090_v39 = vpop.f32.mrf.mxu1 }
 0x273   : > { %1252 = vrot.lane.b32.xlu1 %v1244_v38, %s4315_s19  ;;  %v3304_v52 = vpack.i.bf16 %v1090_v39, %v1088_v37 }
 0x274   : > { %v1094_v42 = vpop.f32.mrf.mxu1 }
 0x275   : > { %3295 = vrot.lane.b32.xlu0 %v3294_v41, %s3553_s30 }
 0x276   : > { %v1096_v45 = vpop.f32.mrf.mxu1 }
 0x277   : > { %1318 = vrot.lane.b32.xlu1 %v1310_v40, %s4313_s20  ;;  %v3309_v53 = vpack.i.bf16 %v1096_v45, %v1094_v42 }
 0x278   : > { %v1098_v5 = vpop.f32.mrf.mxu1 }
 0x279   : > { %3300 = vrot.lane.b32.xlu0 %v3299_v50, %s3554_s15 }
 0x27a   : > { %v1099_v51 = vpop.f32.mrf.mxu1 }
 0x27b   : > { %1338 = vrot.lane.b32.xlu1 %v1330_v49, %s4311_s21 }
 0x27d   : > { %3305 = vrot.lane.b32.xlu0 %v3304_v52, %s4313_s20 }
 0x281   : > { %3310 = vrot.lane.b32.xlu0 %v3309_v53, %s4311_s21  ;;  %s4328_s21 = smov 111  }
 0x285   : > { %1587 = vperm.xlu0 %3232, %v1363_v54  }
 0x2d7   : > { %v3276_v58 = vpop.permute.xlu0 %3275 }
 0x2d8   : > { %v3278_v61 = vunpack.i.h.bf16 %v3276_v58  ;;  %v3277_v62 = vunpack.i.l.bf16 %v3276_v58 }
 0x2d9   : > { %v1189_v59 = vpop.permute.xlu1 %1188 }
 0x2da   : > { %v1191_v4 = vsel %vm775_vm2, %v3278_v61, %v1189_v59  ;;  %v1190_v6 = vsel %vm775_vm2, %v3277_v62, %v3278_v61 }
 0x2db   : > { %v3281_v60 = vpop.permute.xlu0 %3280  ;;  %v1195_v10 = vsel %vm3730_vm4, %v1191_v4, 0.0  ;;  %v1194_v11 = vsel %vm3726_vm3, %v1190_v6, 0.0 }
 0x2dc   : > { %v3283_v12 = vunpack.i.h.bf16 %v3281_v60  ;;  %v3282_v14 = vunpack.i.l.bf16 %v3281_v60  ;;  %v1196_v21 = vadd.f32 %v1194_v11, %v1174_v16  ;;  %v1197_v22 = vadd.f32 %v1195_v10, %v1175_v17 }
 0x2dd   : > { %v1211_v63 = vpop.permute.xlu1 %1210 }
 0x2de   : > { %v1213_v27 = vsel %vm798_vm5, %v3283_v12, %v1211_v63  ;;  %v1212_v13 = vsel %vm798_vm5, %v3282_v14, %v3283_v12 }
 0x2df   : > { %v3286_v1 = vpop.permute.xlu0 %3285  ;;  %v1216_v35 = vadd.f32 %v1212_v13, %v1196_v21  ;;  %v1217_v36 = vadd.f32 %v1213_v27, %v1197_v22  ;;  %v3507_v13 = vld [vmem:[%s4301_s5] sm:$0xff]  }
 0x2e0   : > { %v3288_v8 = vunpack.i.h.bf16 %v3286_v1  ;;  %v3287_v9 = vunpack.i.l.bf16 %v3286_v1 }
 0x2e1   : > { %v1231_v7 = vpop.permute.xlu1 %1230 }
 0x2e2   : > { %v1233_v23 = vsel %vm823_vm6, %v3288_v8, %v1231_v7  ;;  %v1232_v24 = vsel %vm823_vm6, %v3287_v9, %v3288_v8 }
 0x2e3   : > { %v3291_v15 = vpop.permute.xlu0 %3290  ;;  %v1237_v33 = vsel %vm3746_vm9, %v1233_v23, 0.0  ;;  %v1236_v34 = vsel %vm3742_vm7, %v1232_v24, 0.0 }
 0x2e4   : > { %v3293_v19 = vunpack.i.h.bf16 %v3291_v15  ;;  %v3292_v18 = vunpack.i.l.bf16 %v3291_v15  ;;  %v1238_v42 = vadd.f32 %v1236_v34, %v1216_v35  ;;  %v1239_v45 = vadd.f32 %v1237_v33, %v1217_v36 }
 0x2e5   : > { %v1253_v20 = vpop.permute.xlu1 %1252 }
 0x2e6   : > { %v1255_v29 = vsel %vm846_vm8, %v3293_v19, %v1253_v20  ;;  %v1254_v30 = vsel %vm846_vm8, %v3292_v18, %v3293_v19 }
 0x2e7   : > { %v3296_v28 = vpop.permute.xlu0 %3295  ;;  %v1259_v39 = vsel %vm3730_vm4, %v1255_v29, 0.0  ;;  %v1258_v40 = vsel %vm3726_vm3, %v1254_v30, 0.0  ;;  %v3511_v29 = vld [vmem:[%s4301_s5 + $0x20] ss:$0 sps:$4 sm:$0xff]   ;;  %v1679_v30 = vld [vmem:[#allocation3 + $0x5c] ss:$16 sps:$4 sm:$0xff]  }
 0x2e8   : > { %v3298_v31 = vunpack.i.h.bf16 %v3296_v28  ;;  %v3297_v32 = vunpack.i.l.bf16 %v3296_v28  ;;  %v1260_v53 = vadd.f32 %v1258_v40, %v1238_v42  ;;  %v1261_v54 = vadd.f32 %v1259_v39, %v1239_v45  ;;  %v3508_v28 = vld [vmem:[%s4301_s5 + $0x8] sm:$0xff]  }
 0x2e9   : > { %v1319_v52 = vpop.permute.xlu1 %1318 }
 0x2ea   : > { %v1277_v37 = vsel %vm869_vm10, %v3298_v31, %v1275_v56  ;;  %v1276_v38 = vsel %vm869_vm10, %v3297_v32, %v3298_v31  ;;  %v1682_v31 = vunpack.c.l.bf16 %v1679_v30  ;;  %v1704_v32 = vunpack.c.h.bf16 %v1679_v30 }
 0x2eb   : > { %v3301_v41 = vpop.permute.xlu0 %3300  ;;  %v1281_v5 = vsel %vm3746_vm9, %v1277_v37, 0.0  ;;  %v1280_v51 = vsel %vm3742_vm7, %v1276_v38, 0.0 }
 0x2ec   : > { %v3303_v49 = vunpack.i.h.bf16 %v3301_v41  ;;  %v3302_v50 = vunpack.i.l.bf16 %v3301_v41  ;;  %v1282_v61 = vadd.f32 %v1280_v51, %v1260_v53  ;;  %v1283_v1 = vadd.f32 %v1281_v5, %v1261_v54  ;;  %1690 = vrot.lane.b32.xlu0 %v1682_v31, %s3553_s30  ;;  %v1779_v31 = vld [vmem:[%s4304_s8] sm:$0xff] }
 0x2ed   : > { %v1339_v7 = vpop.permute.xlu1 %1338 }
 0x2ee   : > { %v1299_v55 = vsel %vm892_vm11, %v3303_v49, %v1297_v57  ;;  %v1298_v56 = vsel %vm892_vm11, %v3302_v50, %v3303_v49 }
 0x2ef   : > { %v1302_v58 = vsel %vm3726_vm3, %v1298_v56, 0.0  ;;  %v3306_v59 = vpop.permute.xlu0 %3305  ;;  %v1303_v60 = vsel %vm3730_vm4, %v1299_v55, 0.0 }
 0x2f0   : > { %v3308_v62 = vunpack.i.h.bf16 %v3306_v59  ;;  %v3307_v63 = vunpack.i.l.bf16 %v3306_v59  ;;  %v1304_v2 = vadd.f32 %v1302_v58, %v1282_v61  ;;  %v1305_v3 = vadd.f32 %v1303_v60, %v1283_v1  ;;  %1712 = vrot.lane.b32.xlu0 %v1704_v32, %s3554_s15 }
 0x2f2   : > { %v1320_v4 = vsel %vm915_vm12, %v3307_v63, %v3308_v62  ;;  %v1321_v6 = vsel %vm915_vm12, %v3308_v62, %v1319_v52 }
 0x2f3   : > { %v3311_v57 = vpop.permute.xlu0 %3310  ;;  %v1324_v10 = vadd.f32 %v1320_v4, %v1304_v2  ;;  %v1325_v11 = vadd.f32 %v1321_v6, %v1305_v3 }
 0x2f4   : > { %v3313_v8 = vunpack.i.h.bf16 %v3311_v57  ;;  %v3312_v9 = vunpack.i.l.bf16 %v3311_v57 }
 0x2f6   : > { %v1340_v12 = vsel %vm936_vm13, %v3312_v9, %v3313_v8  ;;  %v1341_v14 = vsel %vm936_vm13, %v3313_v8, %v1339_v7 }
 0x2f7   : > { %v1344_v15 = vsel %vm3742_vm7, %v1340_v12, 0.0  ;;  %v1345_v16 = vsel %vm3746_vm9, %v1341_v14, 0.0 }
 0x2f8   : > { %v1346_v17 = vadd.f32 %v1344_v15, %v1324_v10  ;;  %v1347_v19 = vadd.f32 %v1345_v16, %v1325_v11  ;;  %v1723_v16 = vld [vmem:[#allocation3 + $0x7c] ss:$16 sps:$4 sm:$0xff]  }
 0x2fa   : > { %v1350_v18 = vmul.f32 0.2, %v1346_v17  ;;  %vm1348_vm1 = vcmp.ge.f32.partialorder %v1346_v17, 0.0  ;;  %vm1349_vm14 = vcmp.ge.f32.partialorder %v1347_v19, 0.0  ;;  %v1351_v20 = vmul.f32 0.2, %v1347_v19 }
 0x2fc   : > { %v3886_v21 = vsel %vm1348_vm1, %v1346_v17, %v1350_v18  ;;  %v3888_v22 = vsel %vm1349_vm14, %v1347_v19, %v1351_v20  ;;  %v1726_v20 = vunpack.c.l.bf16 %v1723_v16 }
 0x2fd   : > { %v3538_v23 = vpack.c.bf16 %v3888_v22, %v3888_v22  ;;  %v3539_v24 = vpack.c.bf16 %v3886_v21, %v3886_v21 }
 0x2ff   : > { %3082 = vmatprep.subr.msk.bf16.mxu0 %vm594_vm0, %v3538_v23  ;;  %v1431_v27 = vsel %vm594_vm0, %v3539_v24, 0 }
 0x300   : > { %1449 = vmatpush1.bf16.msra.mxu0 %v1431_v27  ;;  %v1588_v32 = vpop.permute.xlu0 %1587 }
 0x301   : > { %1450 = vmatprep.subr.bf16.mxu0 %v3790_v47  ;;  %v3509_v47 = vld [vmem:[%s4301_s5 + $0x10] sm:$0xff]  }
 0x304   : > { %1451 = vmatpush1.bf16.msra.mxu0 %v3794_v48  ;;  %v3510_v48 = vld [vmem:[%s4301_s5 + $0x18] sm:$0xff]  }
 0x307   : > { %3083 = vmatmul.mubr.msk.bf16.vlgmr.msra.gmra.mxu0 %vm1414_vm15, %v3507_v13  ;;  %v1746_v13 = vunpack.c.h.bf16 %v1723_v16 }
 0x308   : > { %1478 = vmatprep.mubr.bf16.mxu0 %v3552_v0 }
 0x30f   : > { %3084 = vmatmul.mubr.msk.bf16.gmra.mxu0 %vm1414_vm15, %v3508_v28 }
 0x310   : > { %1488 = vmatprep.mubr.bf16.mxu0 %v3552_v0 }
 0x317   : > { %3085 = vmatmul.mubr.msk.bf16.gmra.mxu0 %vm1414_vm15, %v3509_v47 }
 0x318   : > { %1498 = vmatprep.mubr.bf16.mxu0 %v3552_v0 }
 0x31f   : > { %3086 = vmatmul.mubr.msk.bf16.gmra.mxu0 %vm1414_vm15, %v3510_v48 }
 0x320   : > { %1508 = vmatprep.mubr.bf16.mxu0 %v3552_v0 }
 0x327   : > { %3087 = vmatmul.mubr.msk.bf16.gmra.mxu0 %vm1414_vm15, %v3511_v29  ;;  %vm1836_vm15 = vcmask 261120  }
 0x328   : > { %2292 = vmatprep.mubr.bf16.mxu0 %v3552_v0 }
 0x3c7   : > { %v1470_v33 = vpop.f32.mrf.mxu0 }
 0x3c9   : > { %v1472_v34 = vpop.f32.mrf.mxu0 }
 0x3ca   : > { %v3185_v35 = vpack.c.bf16 %v1472_v34, %v1470_v33  ;;  %v1691_v33 = vpop.permute.xlu0 %1690 }
 0x3cb   : > { %v1474_v36 = vpop.f32.mrf.mxu0 }
 0x3cc   : > { %1573 = vst [vmem:[#allocation3 + $0x4] sm:$0xff] %v3185_v35 }
 0x3cd   : > { %v1476_v37 = vpop.f32.mrf.mxu0 }
 0x3ce   : > { %v3186_v38 = vpack.c.bf16 %v1476_v37, %v1474_v36  ;;  %v1713_v34 = vpop.permute.xlu0 %1712 }
 0x3cf   : > { %v1480_v39 = vpop.f32.mrf.mxu0 }
 0x3d0   : > { %1574 = vst [vmem:[#allocation3 + $0x14] sm:$0xff] %v3186_v38 }
 0x3d1   : > { %v1482_v40 = vpop.f32.mrf.mxu0 }
 0x3d2   : > { %v3187_v41 = vpack.c.bf16 %v1482_v40, %v1480_v39 }
 0x3d3   : > { %v1484_v42 = vpop.f32.mrf.mxu0  ;;  %v1592_v45 = vld [vmem:[#allocation3] sm:$0xff] }
 0x3d4   : > { %1575 = vst [vmem:[#allocation3 + $0x24] sm:$0xff] %v3187_v41  ;;  %v1594_v49 = vunpack.c.l.bf16 %v1592_v45  ;;  %v1595_v50 = vunpack.c.h.bf16 %v1592_v45 }
 0x3d5   : > { %v1486_v5 = vpop.f32.mrf.mxu0 }
 0x3d6   : > { %v3188_v51 = vpack.c.bf16 %v1486_v5, %v1484_v42  ;;  %v3314_v52 = vpack.i.bf16 %v1595_v50, %v1594_v49 }
 0x3d7   : > { %v1593_v53 = vld [vmem:[#allocation3 + $0x8] ss:$16 sps:$4 sm:$0xff]   ;;  %v1490_v54 = vpop.f32.mrf.mxu0  ;;  %v1614_v55 = vld [vmem:[#allocation3 + $0x10] sm:$0xff] }
 0x3d8   : > { %1576 = vst [vmem:[#allocation3 + $0x34] sm:$0xff] %v3188_v51  ;;  %v1596_v56 = vunpack.c.l.bf16 %v1593_v53  ;;  %3315 = vrot.lane.b32.xlu1 %v3314_v52, %s3555_s16  ;;  %v1616_v58 = vunpack.c.l.bf16 %v1614_v55  ;;  %v1617_v59 = vunpack.c.h.bf16 %v1614_v55  ;;  %v1618_v2 = vunpack.c.h.bf16 %v1593_v53 }
 0x3d9   : > { %v1492_v60 = vpop.f32.mrf.mxu0 }
 0x3da   : > { %1604 = vrot.lane.b32.xlu0 %v1596_v56, %s3555_s16  ;;  %v3922_v61 = vpack.c.bf16 %v1492_v60, %v1490_v54  ;;  %v3319_v62 = vpack.i.bf16 %v1617_v59, %v1616_v58 }
 0x3db   : > { %v1494_v63 = vpop.f32.mrf.mxu0  ;;  %v1634_v1 = vld [vmem:[#allocation3 + $0x20] sm:$0xff] }
 0x3dc   : > { %3320 = vrot.lane.b32.xlu1 %v3319_v62, %s3556_s17  ;;  %v1636_v3 = vunpack.c.l.bf16 %v1634_v1  ;;  %v1637_v4 = vunpack.c.h.bf16 %v1634_v1  ;;  %v1583_v45 = vunpack.c.l.bf16 %v3922_v61  ;;  %v1584_v49 = vunpack.c.h.bf16 %v3922_v61 }
 0x3dd   : > { %v1496_v6 = vpop.f32.mrf.mxu0 }
 0x3de   : > { %1626 = vrot.lane.b32.xlu0 %v1618_v2, %s3556_s17  ;;  %v3324_v57 = vpack.i.bf16 %v1637_v4, %v1636_v3  ;;  %v3334_v23 = vpack.i.bf16 %v1496_v6, %v1494_v63  ;;  %v1590_v59 = vadd.f32 %v1588_v32, %v1583_v45  ;;  %v1591_v60 = vadd.f32 %v1588_v32, %v1584_v49 }
 0x3df   : > { %v1635_v7 = vld [vmem:[#allocation3 + $0x28] ss:$16 sps:$4 sm:$0xff]   ;;  %v1500_v8 = vpop.f32.mrf.mxu0  ;;  %v1656_v9 = vld [vmem:[#allocation3 + $0x30] sm:$0xff] }
 0x3e0   : > { %v1638_v10 = vunpack.c.l.bf16 %v1635_v7  ;;  %3325 = vrot.lane.b32.xlu1 %v3324_v57, %s4317_s18  ;;  %v1658_v11 = vunpack.c.l.bf16 %v1656_v9  ;;  %v1659_v12 = vunpack.c.h.bf16 %v1656_v9  ;;  %v1660_v19 = vunpack.c.h.bf16 %v1635_v7 }
 0x3e1   : > { %v1502_v14 = vpop.f32.mrf.mxu0 }
 0x3e2   : > { %1646 = vrot.lane.b32.xlu0 %v1638_v10, %s4317_s18  ;;  %v3329_v15 = vpack.i.bf16 %v1659_v12, %v1658_v11  ;;  %v3339_v28 = vpack.i.bf16 %v1502_v14, %v1500_v8 }
 0x3e3   : > { %v1504_v17 = vpop.f32.mrf.mxu0 }
 0x3e4   : > { %3330 = vrot.lane.b32.xlu1 %v3329_v15, %s4315_s19 }
 0x3e5   : > { %v1506_v18 = vpop.f32.mrf.mxu0 }
 0x3e6   : > { %1668 = vrot.lane.b32.xlu0 %v1660_v19, %s4315_s19  ;;  %v3344_v29 = vpack.i.bf16 %v1506_v18, %v1504_v17 }
 0x3e7   : > { %v1510_v24 = vpop.f32.mrf.mxu0 }
 0x3e8   : > { %3335 = vrot.lane.b32.xlu1 %v3334_v23, %s3553_s30 }
 0x3e9   : > { %v1512_v27 = vpop.f32.mrf.mxu0 }
 0x3ea   : > { %1734 = vrot.lane.b32.xlu0 %v1726_v20, %s4313_s20  ;;  %v3349_v30 = vpack.i.bf16 %v1512_v27, %v1510_v24 }
 0x3eb   : > { %v1514_v47 = vpop.f32.mrf.mxu0 }
 0x3ec   : > { %3340 = vrot.lane.b32.xlu1 %v3339_v28, %s3554_s15 }
 0x3ed   : > { %v1515_v48 = vpop.f32.mrf.mxu0 }
 0x3ee   : > { %1754 = vrot.lane.b32.xlu0 %v1746_v13, %s4328_s21 }
 0x3f0   : > { %3345 = vrot.lane.b32.xlu1 %v3344_v29, %s4313_s20  ;;  %s3023_s20 = sshll.u32 %s4334_s26, 2 }
 0x3f1   : > { %s465_s23 = scalar_lea.vmem %s4307_s11, %s3023_s20 }
 0x3f4   : > { %3350 = vrot.lane.b32.xlu1 %v3349_v30, %s4328_s21 }
 0x3f8   : > { %2003 = vperm.xlu1 %3273, %v1779_v31  }
 0x44a   : > { %v3316_v35 = vpop.permute.xlu1 %3315 }
 0x44b   : > { %v3318_v38 = vunpack.i.h.bf16 %v3316_v35  ;;  %v3317_v39 = vunpack.i.l.bf16 %v3316_v35 }
 0x44c   : > { %v1605_v36 = vpop.permute.xlu0 %1604 }
 0x44d   : > { %v1607_v42 = vsel %vm775_vm2, %v3318_v38, %v1605_v36  ;;  %v1606_v50 = vsel %vm775_vm2, %v3317_v39, %v3318_v38 }
 0x44e   : > { %v3321_v37 = vpop.permute.xlu1 %3320  ;;  %v1611_v53 = vsel %vm3730_vm4, %v1607_v42, 0.0  ;;  %v1610_v54 = vsel %vm3726_vm3, %v1606_v50, 0.0 }
 0x44f   : > { %v3323_v55 = vunpack.i.h.bf16 %v3321_v37  ;;  %v3322_v56 = vunpack.i.l.bf16 %v3321_v37  ;;  %v1612_v61 = vadd.f32 %v1610_v54, %v1590_v59  ;;  %v1613_v2 = vadd.f32 %v1611_v53, %v1591_v60 }
 0x450   : > { %v1627_v40 = vpop.permute.xlu0 %1626 }
 0x451   : > { %v1629_v6 = vsel %vm798_vm5, %v3323_v55, %v1627_v40  ;;  %v1628_v57 = vsel %vm798_vm5, %v3322_v56, %v3323_v55 }
 0x452   : > { %v3326_v41 = vpop.permute.xlu1 %3325  ;;  %v1632_v15 = vadd.f32 %v1628_v57, %v1612_v61  ;;  %v1633_v16 = vadd.f32 %v1629_v6, %v1613_v2 }
 0x453   : > { %v3328_v51 = vunpack.i.h.bf16 %v3326_v41  ;;  %v3327_v52 = vunpack.i.l.bf16 %v3326_v41 }
 0x454   : > { %v1647_v5 = vpop.permute.xlu0 %1646 }
 0x455   : > { %v1649_v3 = vsel %vm823_vm6, %v3328_v51, %v1647_v5  ;;  %v1648_v4 = vsel %vm823_vm6, %v3327_v52, %v3328_v51 }
 0x456   : > { %v3331_v58 = vpop.permute.xlu1 %3330  ;;  %v1653_v12 = vsel %vm3746_vm9, %v1649_v3, 0.0  ;;  %v1652_v14 = vsel %vm3742_vm7, %v1648_v4, 0.0  ;;  %v3981_v3 = vld [vmem:[#allocation2 + $0x8] sm:$0xff] }
 0x457   : > { %v3333_v62 = vunpack.i.h.bf16 %v3331_v58  ;;  %v3332_v63 = vunpack.i.l.bf16 %v3331_v58  ;;  %v1654_v24 = vadd.f32 %v1652_v14, %v1632_v15  ;;  %v1655_v27 = vadd.f32 %v1653_v12, %v1633_v16 }
 0x458   : > { %v1669_v1 = vpop.permute.xlu0 %1668  ;;  %v3104_v57 = vcombine.high %v3981_v3, %v3785_v46 }
 0x459   : > { %v1671_v8 = vsel %vm846_vm8, %v3333_v62, %v1669_v1  ;;  %v1670_v9 = vsel %vm846_vm8, %v3332_v63, %v3333_v62 }
 0x45a   : > { %v3336_v7 = vpop.permute.xlu1 %3335  ;;  %v1675_v18 = vsel %vm3730_vm4, %v1671_v8, 0.0  ;;  %v1674_v20 = vsel %vm3726_vm3, %v1670_v9, 0.0  ;;  %v3512_v8 = vld [vmem:[%s4303_s7] sm:$0xff]  }
 0x45b   : > { %v3338_v10 = vunpack.i.h.bf16 %v3336_v7  ;;  %v3337_v11 = vunpack.i.l.bf16 %v3336_v7  ;;  %v1676_v30 = vadd.f32 %v1674_v20, %v1654_v24  ;;  %v1677_v31 = vadd.f32 %v1675_v18, %v1655_v27  ;;  %v3516_v9 = vld [vmem:[%s4303_s7 + $0x20] ss:$0 sps:$4 sm:$0xff]  }
 0x45c   : > { %v1735_v29 = vpop.permute.xlu0 %1734  ;;  %v3103_v7 = vcombine.low %v3981_v3, %v3785_v46  ;;  %v3514_v46 = vld [vmem:[%s4303_s7 + $0x10] sm:$0xff]  }
 0x45d   : > { %v1693_v17 = vsel %vm869_vm10, %v3338_v10, %v1691_v33  ;;  %v1692_v19 = vsel %vm869_vm10, %v3337_v11, %v3338_v10  ;;  %v2095_v10 = vld [vmem:[#allocation3 + $0x5c] ss:$16 sps:$4 sm:$0xff]  }
 0x45e   : > { %v3341_v23 = vpop.permute.xlu1 %3340  ;;  %v1697_v47 = vsel %vm3746_vm9, %v1693_v17, 0.0  ;;  %v1696_v48 = vsel %vm3742_vm7, %v1692_v19, 0.0  ;;  %v2098_v11 = vunpack.c.l.bf16 %v2095_v10  ;;  %v2120_v12 = vunpack.c.h.bf16 %v2095_v10  ;;  %v2195_v10 = vld [vmem:[%s465_s23] sm:$0xf] }
 0x45f   : > { %v3343_v13 = vunpack.i.h.bf16 %v3341_v23  ;;  %v3342_v28 = vunpack.i.l.bf16 %v3341_v23  ;;  %v1698_v38 = vadd.f32 %v1696_v48, %v1676_v30  ;;  %v1699_v41 = vadd.f32 %v1697_v47, %v1677_v31 }
 0x460   : > { %v1755_v5 = vpop.permute.xlu0 %1754  ;;  %2106 = vrot.lane.b32.xlu1 %v2098_v11, %s3553_s30 }
 0x461   : > { %v1715_v32 = vsel %vm892_vm11, %v3343_v13, %v1713_v34  ;;  %v1714_v33 = vsel %vm892_vm11, %v3342_v28, %v3343_v13 }
 0x462   : > { %v1718_v35 = vsel %vm3726_vm3, %v1714_v33, 0.0  ;;  %v3346_v36 = vpop.permute.xlu1 %3345  ;;  %v1719_v37 = vsel %vm3730_vm4, %v1715_v32, 0.0 }
 0x463   : > { %v3348_v39 = vunpack.i.h.bf16 %v3346_v36  ;;  %v3347_v40 = vunpack.i.l.bf16 %v3346_v36  ;;  %v1720_v42 = vadd.f32 %v1718_v35, %v1698_v38  ;;  %v1721_v45 = vadd.f32 %v1719_v37, %v1699_v41 }
 0x464   : > { %2128 = vrot.lane.b32.xlu1 %v2120_v12, %s3554_s15 }
 0x465   : > { %v1736_v49 = vsel %vm915_vm12, %v3347_v40, %v3348_v39  ;;  %v1737_v50 = vsel %vm915_vm12, %v3348_v39, %v1735_v29 }
 0x466   : > { %v3351_v34 = vpop.permute.xlu1 %3350  ;;  %v1740_v53 = vadd.f32 %v1736_v49, %v1720_v42  ;;  %v1741_v54 = vadd.f32 %v1737_v50, %v1721_v45 }
 0x467   : > { %v3353_v51 = vunpack.i.h.bf16 %v3351_v34  ;;  %v3352_v52 = vunpack.i.l.bf16 %v3351_v34 }
 0x469   : > { %v1756_v55 = vsel %vm936_vm13, %v3352_v52, %v3353_v51  ;;  %v1757_v56 = vsel %vm936_vm13, %v3353_v51, %v1755_v5 }
 0x46a   : > { %v1760_v58 = vsel %vm3742_vm7, %v1756_v55, 0.0  ;;  %v1761_v59 = vsel %vm3746_vm9, %v1757_v56, 0.0 }
 0x46b   : > { %v1762_v60 = vadd.f32 %v1760_v58, %v1740_v53  ;;  %v1763_v62 = vadd.f32 %v1761_v59, %v1741_v54 }
 0x46d   : > { %v1766_v63 = vmul.f32 0.2, %v1762_v60  ;;  %vm1764_vm1 = vcmp.ge.f32.partialorder %v1762_v60, 0.0  ;;  %vm1765_vm14 = vcmp.ge.f32.partialorder %v1763_v62, 0.0  ;;  %v1767_v1 = vmul.f32 0.2, %v1763_v62 }
 0x46f   : > { %v1768_v61 = vsel %vm1764_vm1, %v1762_v60, %v1766_v63  ;;  %v1769_v2 = vsel %vm1765_vm14, %v1763_v62, %v1767_v1  ;;  %v2139_v60 = vld [vmem:[#allocation3 + $0x7c] ss:$16 sps:$4 sm:$0xff]  }
 0x470   : > { %v3984_v4 = vpack.c.bf16 %v1768_v61, %v3886_v21  ;;  %v3987_v6 = vpack.c.bf16 %v1769_v2, %v3888_v22  ;;  %v3513_v21 = vld [vmem:[%s4303_s7 + $0x8] sm:$0xff]   ;;  %v3515_v22 = vld [vmem:[%s4303_s7 + $0x18] sm:$0xff]   ;;  %v2142_v61 = vunpack.c.l.bf16 %v2139_v60 }
 0x472   : > { %1864 = vmatprep.subr.bf16.mxu1 %v3987_v6 }
 0x473   : > { %1865 = vmatpush1.bf16.msra.mxu1 %v3984_v4 }
 0x474   : > { %1866 = vmatprep.subr.bf16.mxu1 %v3104_v57 }
 0x477   : > { %1867 = vmatpush1.bf16.msra.mxu1 %v3103_v7 }
 0x47a   : > { %3107 = vmatmul.mubr.msk.bf16.vlgmr.msra.gmra.mxu1 %vm1836_vm15, %v3512_v8  ;;  %v2162_v8 = vunpack.c.h.bf16 %v2139_v60 }
 0x47b   : > { %1894 = vmatprep.mubr.bf16.mxu1 %v3552_v0 }
 0x482   : > { %3108 = vmatmul.mubr.msk.bf16.gmra.mxu1 %vm1836_vm15, %v3513_v21 }
 0x483   : > { %1904 = vmatprep.mubr.bf16.mxu1 %v3552_v0 }
 0x48a   : > { %3109 = vmatmul.mubr.msk.bf16.gmra.mxu1 %vm1836_vm15, %v3514_v46 }
 0x48b   : > { %1914 = vmatprep.mubr.bf16.mxu1 %v3552_v0 }
 0x492   : > { %3110 = vmatmul.mubr.msk.bf16.gmra.mxu1 %vm1836_vm15, %v3515_v22 }
 0x493   : > { %1924 = vmatprep.mubr.bf16.mxu1 %v3552_v0 }
 0x49a   : > { %3111 = vmatmul.mubr.msk.bf16.gmra.mxu1 %vm1836_vm15, %v3516_v9 }
 0x49b   : > { %2648 = vmatprep.mubr.bf16.mxu1 %v3552_v0 }
 0x53a   : > { %v1886_v14 = vpop.f32.mrf.mxu1 }
 0x53c   : > { %v1888_v15 = vpop.f32.mrf.mxu1 }
 0x53d   : > { %v3195_v16 = vpack.c.bf16 %v1888_v15, %v1886_v14  ;;  %v2004_v14 = vpop.permute.xlu1 %2003 }
 0x53e   : > { %v1890_v17 = vpop.f32.mrf.mxu1 }
 0x53f   : > { %1989 = vst [vmem:[#allocation3 + $0x4] sm:$0xff] %v3195_v16 }
 0x540   : > { %v1892_v19 = vpop.f32.mrf.mxu1 }
 0x541   : > { %v3196_v18 = vpack.c.bf16 %v1892_v19, %v1890_v17  ;;  %v2107_v15 = vpop.permute.xlu1 %2106 }
 0x542   : > { %v1896_v20 = vpop.f32.mrf.mxu1 }
 0x543   : > { %1990 = vst [vmem:[#allocation3 + $0x14] sm:$0xff] %v3196_v18 }
 0x544   : > { %v1898_v23 = vpop.f32.mrf.mxu1 }
 0x545   : > { %v3197_v24 = vpack.c.bf16 %v1898_v23, %v1896_v20  ;;  %v2129_v16 = vpop.permute.xlu1 %2128 }
 0x546   : > { %v1900_v27 = vpop.f32.mrf.mxu1  ;;  %v2008_v13 = vld [vmem:[#allocation3] sm:$0xff] }
 0x547   : > { %1991 = vst [vmem:[#allocation3 + $0x24] sm:$0xff] %v3197_v24  ;;  %v2010_v28 = vunpack.c.l.bf16 %v2008_v13  ;;  %v2011_v47 = vunpack.c.h.bf16 %v2008_v13 }
 0x548   : > { %v1902_v48 = vpop.f32.mrf.mxu1 }
 0x549   : > { %v3198_v29 = vpack.c.bf16 %v1902_v48, %v1900_v27  ;;  %v3354_v30 = vpack.i.bf16 %v2011_v47, %v2010_v28 }
 0x54a   : > { %v2009_v31 = vld [vmem:[#allocation3 + $0x8] ss:$16 sps:$4 sm:$0xff]   ;;  %v1906_v32 = vpop.f32.mrf.mxu1  ;;  %v2030_v33 = vld [vmem:[#allocation3 + $0x10] sm:$0xff] }
 0x54b   : > { %1992 = vst [vmem:[#allocation3 + $0x34] sm:$0xff] %v3198_v29  ;;  %v2012_v35 = vunpack.c.l.bf16 %v2009_v31  ;;  %3355 = vrot.lane.b32.xlu0 %v3354_v30, %s3555_s16  ;;  %v2032_v36 = vunpack.c.l.bf16 %v2030_v33  ;;  %v2033_v37 = vunpack.c.h.bf16 %v2030_v33  ;;  %v2034_v45 = vunpack.c.h.bf16 %v2009_v31 }
 0x54c   : > { %v1908_v38 = vpop.f32.mrf.mxu1 }
 0x54d   : > { %2020 = vrot.lane.b32.xlu1 %v2012_v35, %s3555_s16  ;;  %v4019_v39 = vpack.c.bf16 %v1908_v38, %v1906_v32  ;;  %v3359_v40 = vpack.i.bf16 %v2033_v37, %v2032_v36 }
 0x54e   : > { %v1910_v41 = vpop.f32.mrf.mxu1  ;;  %v2050_v42 = vld [vmem:[#allocation3 + $0x20] sm:$0xff] }
 0x54f   : > { %1993 = vst [vmem:[#allocation3 + $0x44] sm:$0xff] %v4019_v39  ;;  %3360 = vrot.lane.b32.xlu0 %v3359_v40, %s3556_s17  ;;  %v2052_v49 = vunpack.c.l.bf16 %v2050_v42  ;;  %v2053_v50 = vunpack.c.h.bf16 %v2050_v42  ;;  %v1999_v28 = vunpack.c.l.bf16 %v4019_v39  ;;  %v2000_v47 = vunpack.c.h.bf16 %v4019_v39 }
 0x550   : > { %v1912_v34 = vpop.f32.mrf.mxu1 }
 0x551   : > { %2042 = vrot.lane.b32.xlu1 %v2034_v45, %s3556_s17  ;;  %v3364_v5 = vpack.i.bf16 %v2053_v50, %v2052_v49  ;;  %v3374_v2 = vpack.i.bf16 %v1912_v34, %v1910_v41  ;;  %v2006_v38 = vadd.f32 %v2004_v14, %v1999_v28  ;;  %v2007_v40 = vadd.f32 %v2004_v14, %v2000_v47 }
 0x552   : > { %v2051_v51 = vld [vmem:[#allocation3 + $0x28] ss:$16 sps:$4 sm:$0xff]   ;;  %v1916_v52 = vpop.f32.mrf.mxu1  ;;  %v2072_v53 = vld [vmem:[#allocation3 + $0x30] sm:$0xff] }
 0x553   : > { %v2054_v54 = vunpack.c.l.bf16 %v2051_v51  ;;  %3365 = vrot.lane.b32.xlu0 %v3364_v5, %s4317_s18  ;;  %v2074_v55 = vunpack.c.l.bf16 %v2072_v53  ;;  %v2075_v56 = vunpack.c.h.bf16 %v2072_v53  ;;  %v2076_v63 = vunpack.c.h.bf16 %v2051_v51 }
 0x554   : > { %v1918_v58 = vpop.f32.mrf.mxu1 }
 0x555   : > { %2062 = vrot.lane.b32.xlu1 %v2054_v54, %s4317_s18  ;;  %v3369_v59 = vpack.i.bf16 %v2075_v56, %v2074_v55  ;;  %v3379_v21 = vpack.i.bf16 %v1918_v58, %v1916_v52  ;;  %s4331_s18 = smov 1  }
 0x556   : > { %v1920_v62 = vpop.f32.mrf.mxu1 }
 0x557   : > { %3370 = vrot.lane.b32.xlu0 %v3369_v59, %s4315_s19 }
 0x558   : > { %v1922_v1 = vpop.f32.mrf.mxu1 }
 0x559   : > { %2084 = vrot.lane.b32.xlu1 %v2076_v63, %s4315_s19  ;;  %v3384_v9 = vpack.i.bf16 %v1922_v1, %v1920_v62  ;;  %s469_s19 = scalar_lea.vmem %s4308_s12, %s3023_s20 }
 0x55a   : > { %v1926_v57 = vpop.f32.mrf.mxu1  ;;  %v2552_v12 = vld [vmem:[%s469_s19] sm:$0xf] }
 0x55b   : > { %3375 = vrot.lane.b32.xlu0 %v3374_v2, %s3553_s30 }
 0x55c   : > { %v1928_v7 = vpop.f32.mrf.mxu1 }
 0x55d   : > { %2150 = vrot.lane.b32.xlu1 %v2142_v61, %s4329_s29  ;;  %v3389_v11 = vpack.i.bf16 %v1928_v7, %v1926_v57 }
 0x55e   : > { %v1930_v46 = vpop.f32.mrf.mxu1 }
 0x55f   : > { %3380 = vrot.lane.b32.xlu0 %v3379_v21, %s3554_s15 }
 0x560   : > { %v1931_v22 = vpop.f32.mrf.mxu1 }
 0x561   : > { %2170 = vrot.lane.b32.xlu1 %v2162_v8, %s4328_s21 }
 0x563   : > { %3385 = vrot.lane.b32.xlu0 %v3384_v9, %s4329_s29 }
 0x565   : > { %2363 = vperm.xlu1 %3273, %v2195_v10  }
 0x567   : > { %3390 = vrot.lane.b32.xlu0 %v3389_v11, %s4328_s21 }
 0x56b   : > { %2719 = vperm.xlu0 %3232, %v2552_v12  }
 0x5bd   : > { %v3356_v17 = vpop.permute.xlu0 %3355 }
 0x5be   : > { %v3358_v20 = vunpack.i.h.bf16 %v3356_v17  ;;  %v3357_v23 = vunpack.i.l.bf16 %v3356_v17 }
 0x5bf   : > { %v2021_v19 = vpop.permute.xlu1 %2020 }
 0x5c0   : > { %v2023_v13 = vsel %vm775_vm2, %v3358_v20, %v2021_v19  ;;  %v2022_v48 = vsel %vm775_vm2, %v3357_v23, %v3358_v20 }
 0x5c1   : > { %v3361_v18 = vpop.permute.xlu0 %3360  ;;  %v2027_v32 = vsel %vm3730_vm4, %v2023_v13, 0.0  ;;  %v2026_v33 = vsel %vm3726_vm3, %v2022_v48, 0.0 }
 0x5c2   : > { %v3363_v35 = vunpack.i.h.bf16 %v3361_v18  ;;  %v3362_v36 = vunpack.i.l.bf16 %v3361_v18  ;;  %v2028_v39 = vadd.f32 %v2026_v33, %v2006_v38  ;;  %v2029_v49 = vadd.f32 %v2027_v32, %v2007_v40 }
 0x5c3   : > { %v2043_v24 = vpop.permute.xlu1 %2042 }
 0x5c4   : > { %v2045_v5 = vsel %vm798_vm5, %v3363_v35, %v2043_v24  ;;  %v2044_v51 = vsel %vm798_vm5, %v3362_v36, %v3363_v35 }
 0x5c5   : > { %v3366_v27 = vpop.permute.xlu0 %3365  ;;  %v2048_v60 = vadd.f32 %v2044_v51, %v2028_v39  ;;  %v2049_v62 = vadd.f32 %v2045_v5, %v2029_v49  ;;  %v2202_v51 = vld [vmem:[#allocation2] sm:$0xff] }
 0x5c6   : > { %v3368_v30 = vunpack.i.h.bf16 %v3366_v27  ;;  %v3367_v31 = vunpack.i.l.bf16 %v3366_v27 }
 0x5c7   : > { %v2063_v29 = vpop.permute.xlu1 %2062 }
 0x5c8   : > { %v2065_v50 = vsel %vm823_vm6, %v3368_v30, %v2063_v29  ;;  %v2064_v34 = vsel %vm823_vm6, %v3367_v31, %v3368_v30 }
 0x5c9   : > { %v3371_v37 = vpop.permute.xlu0 %3370  ;;  %v2069_v58 = vsel %vm3746_vm9, %v2065_v50, 0.0  ;;  %v2068_v59 = vsel %vm3742_vm7, %v2064_v34, 0.0 }
 0x5ca   : > { %v3373_v41 = vunpack.i.h.bf16 %v3371_v37  ;;  %v3372_v42 = vunpack.i.l.bf16 %v3371_v37  ;;  %v2070_v7 = vadd.f32 %v2068_v59, %v2048_v60  ;;  %v2071_v8 = vadd.f32 %v2069_v58, %v2049_v62  ;;  %v2817_v58 = vld [vmem:[#allocation3 + $0x2c] sm:$0xc]  ;;  %v2842_v62 = vld [vmem:[#allocation3 + $0x3c] sm:$0x3] }
 0x5cb   : > { %v2085_v45 = vpop.permute.xlu1 %2084  ;;  %v2820_v59 = vunpack.c.l.bf16 %v2817_v58 }
 0x5cc   : > { %v2087_v53 = vsel %vm846_vm8, %v3373_v41, %v2085_v45  ;;  %v2086_v54 = vsel %vm846_vm8, %v3372_v42, %v3373_v41 }
 0x5cd   : > { %v3376_v52 = vpop.permute.xlu0 %3375  ;;  %v2091_v61 = vsel %vm3730_vm4, %v2087_v53, 0.0  ;;  %v2090_v2 = vsel %vm3726_vm3, %v2086_v54, 0.0  ;;  %v3125_v53 = vcombine.low %v3981_v3, %v2202_v51  ;;  %v3519_v54 = vld [vmem:[%s4305_s9] sm:$0xff]   ;;  %v2826_v60 = vrot.slane %v2820_v59, 4 }
 0x5ce   : > { %v3378_v55 = vunpack.i.h.bf16 %v3376_v52  ;;  %v3377_v56 = vunpack.i.l.bf16 %v3376_v52  ;;  %v2092_v11 = vadd.f32 %v2090_v2, %v2070_v7  ;;  %v2093_v12 = vadd.f32 %v2091_v61, %v2071_v8  ;;  %v2887_v2 = vld [vmem:[#allocation3 + $0x4c] sm:$0x3] }
 0x5cf   : > { %v2151_v10 = vpop.permute.xlu1 %2150  ;;  %v3126_v52 = vcombine.high %v3981_v3, %v2202_v51  ;;  %v3520_v3 = vld [vmem:[%s4305_s9 + $0x8] sm:$0xff]   ;;  %2831 = vrot.lane.b32.xlu0 %v2826_v60, %s3553_s30 }
 0x5d0   : > { %v2109_v63 = vsel %vm869_vm10, %v3378_v55, %v2107_v15  ;;  %v2108_v1 = vsel %vm869_vm10, %v3377_v56, %v3378_v55  ;;  %v3521_v55 = vld [vmem:[%s4306_s10] sm:$0xff]   ;;  %v3524_v56 = vld [vmem:[%s4306_s10 + $0x10] ss:$0 sps:$4 sm:$0x33]  }
 0x5d1   : > { %v3381_v57 = vpop.permute.xlu0 %3380  ;;  %v2113_v22 = vsel %vm3746_vm9, %v2109_v63, 0.0  ;;  %v2112_v9 = vsel %vm3742_vm7, %v2108_v1, 0.0  ;;  %v2845_v63 = vunpack.c.l.bf16 %v2842_v62  ;;  %v2864_v1 = vld [vmem:[#allocation3 + $0x3c] sm:$0xc] }
 0x5d2   : > { %v3383_v21 = vunpack.i.h.bf16 %v3381_v57  ;;  %v3382_v46 = vunpack.i.l.bf16 %v3381_v57  ;;  %v2115_v20 = vadd.f32 %v2113_v22, %v2093_v12  ;;  %v2114_v23 = vadd.f32 %v2112_v9, %v2092_v11 }
 0x5d3   : > { %v2171_v47 = vpop.permute.xlu1 %2170  ;;  %2853 = vrot.lane.b32.xlu0 %v2845_v63, %s3554_s15  ;;  %v2890_v57 = vunpack.c.l.bf16 %v2887_v2 }
 0x5d4   : > { %v2131_v14 = vsel %vm892_vm11, %v3383_v21, %v2129_v16  ;;  %v2130_v15 = vsel %vm892_vm11, %v3382_v46, %v3383_v21 }
 0x5d5   : > { %v2135_v17 = vsel %vm3730_vm4, %v2131_v14, 0.0  ;;  %v2134_v19 = vsel %vm3726_vm3, %v2130_v15, 0.0  ;;  %v3386_v18 = vpop.permute.xlu0 %3385 }
 0x5d6   : > { %v3388_v24 = vunpack.i.h.bf16 %v3386_v18  ;;  %v3387_v27 = vunpack.i.l.bf16 %v3386_v18  ;;  %v2137_v13 = vadd.f32 %v2135_v17, %v2115_v20  ;;  %v2136_v28 = vadd.f32 %v2134_v19, %v2114_v23 }
 0x5d8   : > { %v2153_v48 = vsel %vm915_vm12, %v3388_v24, %v2151_v10  ;;  %v2152_v16 = vsel %vm915_vm12, %v3387_v27, %v3388_v24 }
 0x5d9   : > { %v3391_v29 = vpop.permute.xlu0 %3390  ;;  %v2157_v32 = vadd.f32 %v2153_v48, %v2137_v13  ;;  %v2156_v33 = vadd.f32 %v2152_v16, %v2136_v28 }
 0x5da   : > { %v3393_v30 = vunpack.i.h.bf16 %v3391_v29  ;;  %v3392_v31 = vunpack.i.l.bf16 %v3391_v29 }
 0x5dc   : > { %v2173_v35 = vsel %vm936_vm13, %v3393_v30, %v2171_v47  ;;  %v2172_v36 = vsel %vm936_vm13, %v3392_v31, %v3393_v30 }
 0x5dd   : > { %v2177_v37 = vsel %vm3746_vm9, %v2173_v35, 0.0  ;;  %v2176_v38 = vsel %vm3742_vm7, %v2172_v36, 0.0 }
 0x5de   : > { %v2179_v40 = vadd.f32 %v2177_v37, %v2157_v32  ;;  %v2178_v41 = vadd.f32 %v2176_v38, %v2156_v33 }
 0x5e0   : > { %vm2181_vm1 = vcmp.ge.f32.partialorder %v2179_v40, 0.0  ;;  %v2183_v42 = vmul.f32 0.2, %v2179_v40  ;;  %vm2180_vm14 = vcmp.ge.f32.partialorder %v2178_v41, 0.0  ;;  %v2182_v45 = vmul.f32 0.2, %v2178_v41 }
 0x5e2   : > { %v2185_v39 = vsel %vm2181_vm1, %v2179_v40, %v2183_v42  ;;  %v2184_v49 = vsel %vm2180_vm14, %v2178_v41, %v2182_v45 }
 0x5e3   : > { %v3542_v50 = vpack.c.bf16 %v2185_v39, %v2185_v39  ;;  %v3543_v34 = vpack.c.bf16 %v2184_v49, %v2184_v49 }
 0x5e5   : > { %3131 = vmatprep.subr.msk.bf16.mxu0 %vm594_vm0, %v3542_v50  ;;  %3149 = vmatprep.subr.msk.bf16.mxu1 %vm594_vm0, %v3542_v50  ;;  %v2255_v5 = vsel %vm594_vm0, %v3543_v34, 0  ;;  %vm2244_vm0 = vcmask 326656  }
 0x5e6   : > { %2271 = vmatpush1.bf16.msra.mxu0 %v2255_v5  ;;  %2627 = vmatpush1.bf16.msra.mxu1 %v2255_v5 }
 0x5e7   : > { %2272 = vmatprep.subr.bf16.mxu0 %v3987_v6  ;;  %2628 = vmatprep.subr.bf16.mxu1 %v3987_v6  ;;  %v3523_v6 = vld [vmem:[%s4305_s9 + $0x10] ss:$0 sps:$4 sm:$0x33]  }
 0x5ea   : > { %2273 = vmatpush1.bf16.msra.mxu0 %v3984_v4  ;;  %2629 = vmatpush1.bf16.msra.mxu1 %v3984_v4  ;;  %v3522_v4 = vld [vmem:[%s4306_s10 + $0x8] sm:$0xff]  }
 0x5eb   : > { %2274 = vmatprep.subr.bf16.mxu0 %v3126_v52  ;;  %2630 = vmatprep.subr.bf16.mxu1 %v3126_v52 }
 0x5ee   : > { %2275 = vmatpush1.bf16.msra.mxu0 %v3125_v53  ;;  %2631 = vmatpush1.bf16.msra.mxu1 %v3125_v53 }
 0x5f1   : > { %3132 = vmatmul.mubr.msk.bf16.vlgmr.msra.gmra.mxu0 %vm2244_vm0, %v3519_v54  ;;  %3150 = vmatmul.mubr.msk.bf16.vlgmr.msra.gmra.mxu1 %vm2244_vm0, %v3521_v55 }
 0x5f2   : > { %2302 = vmatprep.mubr.bf16.mxu0 %v3552_v0  ;;  %2658 = vmatprep.mubr.bf16.mxu1 %v3552_v0 }
 0x5f9   : > { %3133 = vmatmul.mubr.msk.bf16.gmra.mxu0 %vm2244_vm0, %v3520_v3  ;;  %3151 = vmatmul.mubr.msk.bf16.gmra.mxu1 %vm2244_vm0, %v3522_v4 }
 0x5fa   : > { %2312 = vmatprep.mubr.bf16.mxu0 %v3552_v0  ;;  %2668 = vmatprep.mubr.bf16.mxu1 %v3552_v0  ;;  %v2867_v0 = vunpack.c.l.bf16 %v2864_v1 }
 0x5fc   : > { %v2873_v61 = vrot.slane %v2867_v0, 4 }
 0x5fe   : > { %2878 = vrot.lane.b32.xlu1 %v2873_v61, %s4329_s29 }
 0x601   : > { %3134 = vmatmul.mubr.msk.bf16.gmra.mxu0 %vm2244_vm0, %v3523_v6  ;;  %3152 = vmatmul.mubr.msk.bf16.gmra.mxu1 %vm2244_vm0, %v3524_v56 }
 0x602   : > { %2898 = vrot.lane.b32.xlu1 %v2890_v57, %s4328_s21 }
 0x6b1   : > { %v2294_v7 = vpop.f32.mrf.mxu0  ;;  %v2650_v8 = vpop.f32.mrf.mxu1 }
 0x6b3   : > { %v2296_v21 = vpop.f32.mrf.mxu0  ;;  %v2652_v46 = vpop.f32.mrf.mxu1 }
 0x6b4   : > { %v3205_v22 = vpack.c.bf16 %v2296_v21, %v2294_v7  ;;  %v3210_v23 = vpack.c.bf16 %v2652_v46, %v2650_v8 }
 0x6b5   : > { %v2298_v9 = vpop.f32.mrf.mxu0  ;;  %v2654_v10 = vpop.f32.mrf.mxu1 }
 0x6b6   : > { %2353 = vst [vmem:[#allocation3 + $0x4] sm:$0xff] %v3205_v22 }
 0x6b7   : > { %v2300_v11 = vpop.f32.mrf.mxu0  ;;  %v2656_v12 = vpop.f32.mrf.mxu1 }
 0x6b8   : > { %v3206_v14 = vpack.c.bf16 %v2300_v11, %v2298_v9  ;;  %v3211_v38 = vpack.c.bf16 %v2656_v12, %v2654_v10 }
 0x6b9   : > { %v2304_v15 = vpop.f32.mrf.mxu0  ;;  %v2660_v17 = vpop.f32.mrf.mxu1 }
 0x6ba   : > { %2354 = vst [vmem:[#allocation3 + $0x14] sm:$0xff] %v3206_v14 }
 0x6bb   : > { %v2306_v19 = vpop.f32.mrf.mxu0  ;;  %v2662_v18 = vpop.f32.mrf.mxu1 }
 0x6bc   : > { %v3207_v20 = vpack.c.bf16 %v2306_v19, %v2304_v15  ;;  %v3212_v45 = vpack.c.bf16 %v2662_v18, %v2660_v17 }
 0x6bd   : > { %v2308_v24 = vpop.f32.mrf.mxu0  ;;  %v2368_v27 = vld [vmem:[#allocation3] sm:$0x33]  ;;  %v2369_v13 = vld [vmem:[#allocation3 + $0x8] sm:$0x3]  ;;  %v4118_v28 = vld [vmem:[#allocation3] sm:$0xcc]  ;;  %v2664_v47 = vpop.f32.mrf.mxu1 }
 0x6be   : > { %2355 = vst [vmem:[#allocation3 + $0x24] sm:$0xff] %v3207_v20  ;;  %v2371_v48 = vunpack.c.h.bf16 %v2368_v27  ;;  %v2372_v16 = vunpack.c.l.bf16 %v2369_v13  ;;  %v4120_v29 = vld [vmem:[#allocation3 + $0x8] sm:$0xc]  ;;  %v2370_v54 = vunpack.c.l.bf16 %v2368_v27  ;;  %v2392_v4 = vunpack.c.l.bf16 %v4118_v28 }
 0x6bf   : > { %v2310_v30 = vpop.f32.mrf.mxu0  ;;  %2709 = vst [vmem:[#allocation3 + $0x4] sm:$0xff] %v3210_v23  ;;  %v2666_v31 = vpop.f32.mrf.mxu1 }
 0x6c0   : > { %v3208_v32 = vpack.c.bf16 %v2310_v30, %v2308_v24  ;;  %v3394_v33 = vpack.i.bf16 %v2372_v16, %v2371_v48  ;;  %v3213_v1 = vpack.c.bf16 %v2666_v31, %v2664_v47  ;;  %v2398_v12 = vrot.slane %v2392_v4, 4 }
 0x6c1   : > { %v4122_v35 = vld [vmem:[#allocation3 + $0x10] sm:$0x33]  ;;  %v4124_v36 = vld [vmem:[#allocation3 + $0x18] sm:$0x3]  ;;  %v4126_v37 = vld [vmem:[#allocation3 + $0x10] sm:$0xcc]  ;;  %v2314_v40 = vpop.f32.mrf.mxu0  ;;  %v2670_v41 = vpop.f32.mrf.mxu1 }
 0x6c2   : > { %v4128_v42 = vld [vmem:[#allocation3 + $0x18] sm:$0xc]  ;;  %2356 = vst [vmem:[#allocation3 + $0x34] sm:$0xff] %v3208_v32  ;;  %3395 = vrot.lane.b32.xlu0 %v3394_v33, %s3555_s16  ;;  %v2415_v16 = vunpack.c.l.bf16 %v4122_v35  ;;  %v2437_v30 = vunpack.c.l.bf16 %v4126_v37 }
 0x6c3   : > { %2710 = vst [vmem:[#allocation3 + $0x14] sm:$0xff] %v3211_v38  ;;  %v2316_v39 = vpop.f32.mrf.mxu0  ;;  %v2672_v49 = vpop.f32.mrf.mxu1 }
 0x6c4   : > { %v3209_v50 = vpack.c.bf16 %v2316_v39, %v2314_v40  ;;  %v3214_v9 = vpack.c.bf16 %v2672_v49, %v2670_v41 }
 0x6c5   : > { %v4131_v34 = vld [vmem:[#allocation3 + $0x24] sm:$0x33]  ;;  %v4133_v5 = vld [vmem:[#allocation3 + $0x24] sm:$0xcc]  ;;  %v2318_v51 = vpop.f32.mrf.mxu0  ;;  %v2674_v52 = vpop.f32.mrf.mxu1 }
 0x6c6   : > { %2357 = vst [vmem:[#allocation3 + $0x44] sm:$0x33] %v3209_v50  ;;  %v2724_v53 = vld [vmem:[#allocation3] sm:$0x33]  ;;  %v2725_v55 = vld [vmem:[#allocation3 + $0x8] sm:$0x3] }
 0x6c7   : > { %v2746_v3 = vld [vmem:[#allocation3] sm:$0xcc]  ;;  %2711 = vst [vmem:[#allocation3 + $0x24] sm:$0xff] %v3212_v45  ;;  %v2726_v6 = vunpack.c.l.bf16 %v2724_v53  ;;  %v2727_v56 = vunpack.c.h.bf16 %v2724_v53  ;;  %v2728_v58 = vunpack.c.l.bf16 %v2725_v55  ;;  %v2747_v60 = vld [vmem:[#allocation3 + $0x8] sm:$0xc]  ;;  %v2319_v62 = vpop.f32.mrf.mxu0  ;;  %v2675_v63 = vpop.f32.mrf.mxu1  ;;  %v2443_v51 = vrot.slane %v2437_v30, 4 }
 0x6c8   : > { %v2748_v59 = vunpack.c.l.bf16 %v2746_v3  ;;  %v2749_v0 = vunpack.c.h.bf16 %v2746_v3  ;;  %v2750_v61 = vunpack.c.l.bf16 %v2747_v60  ;;  %v2393_v60 = vunpack.c.h.bf16 %v4118_v28 }
 0x6c9   : > { %v3399_v2 = vpack.i.bf16 %v2727_v56, %v2726_v6  ;;  %v3404_v57 = vpack.i.bf16 %v2370_v54, %v2728_v58  ;;  %v4136_v8 = vld [vmem:[#allocation3 + $0x34] sm:$0x33]  ;;  %v4138_v21 = vld [vmem:[#allocation3 + $0x34] sm:$0xcc]  ;;  %v2394_v62 = vunpack.c.l.bf16 %v4120_v29  ;;  %v2417_v29 = vunpack.c.l.bf16 %v4124_v36 }
 0x6ca   : > { %v2754_v7 = vrot.slane %v2748_v59, 4  ;;  %v2755_v46 = vrot.slane %v2749_v0, 4  ;;  %v2756_v22 = vrot.slane %v2750_v61, 4  ;;  %v2769_v10 = vld [vmem:[#allocation3 + $0x10] sm:$0x33]  ;;  %2712 = vst [vmem:[#allocation3 + $0x34] sm:$0xff] %v3213_v1 }
 0x6cb   : > { %v2770_v11 = vld [vmem:[#allocation3 + $0x18] sm:$0x3]  ;;  %3400 = vrot.lane.b32.xlu1 %v3399_v2, %s3555_s16  ;;  %3405 = vrot.lane.b32.xlu0 %v3404_v57, %s3555_s16  ;;  %v2791_v14 = vld [vmem:[#allocation3 + $0x10] sm:$0xcc]  ;;  %v2792_v15 = vld [vmem:[#allocation3 + $0x18] sm:$0xc]  ;;  %v2771_v17 = vunpack.c.l.bf16 %v2769_v10  ;;  %v2772_v19 = vunpack.c.h.bf16 %v2769_v10  ;;  %v2462_v10 = vunpack.c.l.bf16 %v4133_v5 }
 0x6cc   : > { %v2793_v18 = vunpack.c.l.bf16 %v2791_v14  ;;  %v2794_v20 = vunpack.c.h.bf16 %v2791_v14  ;;  %v3409_v23 = vpack.i.bf16 %v2755_v46, %v2754_v7  ;;  %v3414_v24 = vpack.i.bf16 %v2398_v12, %v2756_v22  ;;  %s4330_s16 = smov 15  }
 0x6cd   : > { %v4142_v27 = vld [vmem:[#allocation3 + $0x44] sm:$0x33]  ;;  %v2773_v13 = vunpack.c.l.bf16 %v2770_v11  ;;  %v2795_v47 = vunpack.c.l.bf16 %v2792_v15  ;;  %v3419_v38 = vpack.i.bf16 %v2772_v19, %v2771_v17  ;;  %v2399_v57 = vrot.slane %v2393_v60, 4  ;;  %v2461_v15 = vld [vmem:[#allocation3 + $0x2c] sm:$0xc] }
 0x6ce   : > { %v2816_v48 = vld [vmem:[#allocation3 + $0x24] sm:$0xcc]  ;;  %2713 = vst [vmem:[#allocation3 + $0x44] sm:$0x33] %v3214_v9  ;;  %v2799_v31 = vrot.slane %v2793_v18, 4  ;;  %v2800_v32 = vrot.slane %v2794_v20, 4  ;;  %v2416_v46 = vunpack.c.h.bf16 %v4122_v35  ;;  %v2438_v22 = vunpack.c.h.bf16 %v4126_v37 }
 0x6cf   : > { %3410 = vrot.lane.b32.xlu1 %v3409_v23, %s3556_s17  ;;  %3415 = vrot.lane.b32.xlu0 %v3414_v24, %s3556_s17  ;;  %v2818_v33 = vunpack.c.l.bf16 %v2816_v48  ;;  %v3424_v40 = vpack.i.bf16 %v2415_v16, %v2773_v13  ;;  %v2801_v41 = vrot.slane %v2795_v47, 4  ;;  %v2819_v45 = vunpack.c.h.bf16 %v2816_v48  ;;  %v2486_v47 = vld [vmem:[#allocation3 + $0x3c] sm:$0x3]  ;;  %v2508_v48 = vld [vmem:[#allocation3 + $0x3c] sm:$0xc] }
 0x6d0   : > { %v3429_v52 = vpack.i.bf16 %v2800_v32, %v2799_v31  ;;  %v2400_v7 = vrot.slane %v2394_v62, 4  ;;  %v2439_v9 = vunpack.c.l.bf16 %v4128_v42  ;;  %v2463_v11 = vunpack.c.h.bf16 %v4133_v5 }
 0x6d1   : > { %v2863_v39 = vld [vmem:[#allocation3 + $0x34] sm:$0xcc]  ;;  %v2824_v53 = vrot.slane %v2818_v33, 4  ;;  %v3434_v54 = vpack.i.bf16 %v2443_v51, %v2801_v41  ;;  %v2825_v55 = vrot.slane %v2819_v45, 4  ;;  %v2841_v56 = vld [vmem:[#allocation3 + $0x34] sm:$0x33]  ;;  %v3464_v35 = vpack.i.bf16 %v2417_v29, %v2416_v46 }
 0x6d2   : > { %v2865_v49 = vunpack.c.l.bf16 %v2863_v39  ;;  %v2866_v50 = vunpack.c.h.bf16 %v2863_v39  ;;  %v2843_v0 = vunpack.c.l.bf16 %v2841_v56  ;;  %v2844_v61 = vunpack.c.h.bf16 %v2841_v56  ;;  %v2531_v41 = vld [vmem:[#allocation3 + $0x4c] sm:$0x3] }
 0x6d3   : > { %3420 = vrot.lane.b32.xlu1 %v3419_v38, %s4330_s16  ;;  %3425 = vrot.lane.b32.xlu0 %v3424_v40, %s4330_s16  ;;  %v3439_v63 = vpack.i.bf16 %v2825_v55, %v2824_v53  ;;  %v2444_v12 = vrot.slane %v2438_v22, 4  ;;  %v2445_v14 = vrot.slane %v2439_v9, 4  ;;  %v3449_v17 = vpack.i.bf16 %v2400_v7, %v2399_v57 }
 0x6d4   : > { %v2871_v3 = vrot.slane %v2865_v49, 4  ;;  %v2872_v4 = vrot.slane %v2866_v50, 4  ;;  %v3444_v28 = vpack.i.bf16 %v2844_v61, %v2843_v0  ;;  %v2468_v19 = vrot.slane %v2462_v10, 4  ;;  %v2720_v49 = vpop.permute.xlu0 %2719  ;;  %v2364_v50 = vpop.permute.xlu1 %2363 }
 0x6d5   : > { %v2886_v6 = vld [vmem:[#allocation3 + $0x44] sm:$0x33]  ;;  %v2469_v37 = vrot.slane %v2463_v11, 4  ;;  %v2464_v36 = vunpack.c.l.bf16 %v2461_v15  ;;  %v3469_v42 = vpack.i.bf16 %v2445_v14, %v2444_v12  ;;  %v2487_v18 = vunpack.c.l.bf16 %v4136_v8 }
 0x6d6   : > { %v2888_v58 = vunpack.c.l.bf16 %v2886_v6  ;;  %v2889_v59 = vunpack.c.h.bf16 %v2886_v6  ;;  %v3454_v1 = vpack.i.bf16 %v2872_v4, %v2871_v3  ;;  %v2488_v20 = vunpack.c.h.bf16 %v4136_v8 }
 0x6d7   : > { %3430 = vrot.lane.b32.xlu1 %v3429_v52, %s4331_s18  ;;  %3435 = vrot.lane.b32.xlu0 %v3434_v54, %s4331_s18  ;;  %v3474_v5 = vpack.i.bf16 %v2469_v37, %v2468_v19  ;;  %v2509_v23 = vunpack.c.l.bf16 %v4138_v21  ;;  %v2510_v24 = vunpack.c.h.bf16 %v4138_v21  ;;  %v2470_v13 = vrot.slane %v2464_v36, 4 }
 0x6d8   : > { %v3459_v2 = vpack.i.bf16 %v2889_v59, %v2888_v58  ;;  %v3479_v16 = vpack.i.bf16 %v2488_v20, %v2487_v18  ;;  %v2489_v32 = vunpack.c.l.bf16 %v2486_v47  ;;  %v2511_v8 = vunpack.c.l.bf16 %v2508_v48  ;;  %v4181_v51 = vpop.permute.xlu0 %2831  ;;  %v4183_v52 = vpop.permute.xlu1 %2878  ;;  %v2714_v58 = vld [vmem:[#allocation3 + $0x24] sm:$0x33] }
 0x6d9   : > { %v2515_v30 = vrot.slane %v2509_v23, 4  ;;  %v2516_v31 = vrot.slane %v2510_v24, 4  ;;  %v2532_v38 = vunpack.c.l.bf16 %v4142_v27  ;;  %v2533_v21 = vunpack.c.h.bf16 %v4142_v27 }
 0x6da   : > { %v2517_v40 = vrot.slane %v2511_v8, 4  ;;  %v2534_v39 = vunpack.c.l.bf16 %v2531_v41  ;;  %v2716_v0 = vunpack.c.h.bf16 %v2714_v58  ;;  %v2360_v7 = vunpack.c.h.bf16 %v4131_v34 }
 0x6db   : > { %3440 = vrot.lane.b32.xlu1 %v3439_v63, %s3553_s30  ;;  %3455 = vrot.lane.b32.xlu0 %v3454_v1, %s4329_s29  ;;  %v3484_v33 = vpack.i.bf16 %v2516_v31, %v2515_v30  ;;  %v3489_v45 = vpack.i.bf16 %v2533_v21, %v2532_v38  ;;  %v2715_v1 = vunpack.c.l.bf16 %v2714_v58 }
 0x6dc   : > { %v4185_v27 = vpop.permute.xlu0 %2853  ;;  %v4187_v53 = vpop.permute.xlu1 %2898 }
 0x6dd   : > { %v2722_v15 = vadd.f32 %v2720_v49, %v2715_v1 }
 0x6df   : > { %3445 = vrot.lane.b32.xlu1 %v3444_v28, %s3554_s15  ;;  %3460 = vrot.lane.b32.xlu0 %v3459_v2, %s4328_s21 }
 0x6e3   : > { %3450 = vrot.lane.b32.xlu1 %v3449_v17, %s3556_s17  ;;  %3465 = vrot.lane.b32.xlu0 %v3464_v35, %s4330_s16  ;;  %v2359_v17 = vunpack.c.l.bf16 %v4131_v34  ;;  %v2723_v35 = vadd.f32 %v2720_v49, %v2716_v0 }
 0x6e5   : > { %v2366_v30 = vadd.f32 %v2364_v50, %v2359_v17 }
 0x6e7   : > { %3470 = vrot.lane.b32.xlu1 %v3469_v42, %s4331_s18  ;;  %3475 = vrot.lane.b32.xlu0 %v3474_v5, %s3553_s30 }
 0x6eb   : > { %2475 = vrot.lane.b32.xlu1 %v2470_v13, %s3553_s30  ;;  %3480 = vrot.lane.b32.xlu0 %v3479_v16, %s3554_s15  ;;  %v2367_v16 = vadd.f32 %v2364_v50, %v2360_v7  ;;  %s4332_s30 = sshll.u32 %s4334_s26, 3 }
 0x6ef   : > { %2497 = vrot.lane.b32.xlu1 %v2489_v32, %s3554_s15  ;;  %3485 = vrot.lane.b32.xlu0 %v3484_v33, %s4329_s29 }
 0x6f3   : > { %2522 = vrot.lane.b32.xlu1 %v2517_v40, %s4329_s29  ;;  %3490 = vrot.lane.b32.xlu0 %v3489_v45, %s4328_s21 }
 0x6f7   : > { %2542 = vrot.lane.b32.xlu1 %v2534_v39, %s4328_s21  ;;  %s474_s21 = scalar_lea.vmem %s4309_s13, %s4332_s30 }
 0x734   : > { %v3396_v54 = vpop.permute.xlu0 %3395 }
 0x735   : > { %v3398_v61 = vunpack.i.h.bf16 %v3396_v54  ;;  %v3397_v2 = vunpack.i.l.bf16 %v3396_v54 }
 0x737   : > { %v2383_v37 = vsel %vm775_vm2, %v3397_v2, %v3398_v61 }
 0x738   : > { %v2387_v32 = vsel %vm3730_vm4, %v2383_v37, 0.0 }
 0x73d   : > { %v3401_v55 = vpop.permute.xlu1 %3400  ;;  %v3406_v3 = vpop.permute.xlu0 %3405 }
 0x73e   : > { %v3403_v4 = vunpack.i.h.bf16 %v3401_v55  ;;  %v3402_v6 = vunpack.i.l.bf16 %v3401_v55  ;;  %v3407_v56 = vunpack.i.l.bf16 %v3406_v3  ;;  %v3408_v57 = vunpack.i.h.bf16 %v3406_v3 }
 0x740   : > { %v2738_v62 = vsel %vm775_vm2, %v3402_v6, %v3403_v4  ;;  %v2739_v63 = vsel %vm775_vm2, %v3403_v4, %v3407_v56  ;;  %v2382_v36 = vsel %vm775_vm2, %v3408_v57, %v3397_v2  ;;  %v2389_v4 = vadd.f32 %v2387_v32, %v2367_v16 }
 0x741   : > { %v3411_v59 = vpop.permute.xlu1 %3410  ;;  %v4189_v60 = vpop.permute.xlu0 %3415  ;;  %v2742_v46 = vsel %vm3726_vm3, %v2738_v62, 0.0  ;;  %v2743_v22 = vsel %vm3730_vm4, %v2739_v63, 0.0  ;;  %v2386_v21 = vsel %vm3726_vm3, %v2382_v36, 0.0 }
 0x742   : > { %v3413_v9 = vunpack.i.h.bf16 %v3411_v59  ;;  %v3412_v10 = vunpack.i.l.bf16 %v3411_v59  ;;  %v3417_v11 = vunpack.i.l.bf16 %v4189_v60  ;;  %v2744_v42 = vadd.f32 %v2742_v46, %v2722_v15 }
 0x743   : > { %v2745_v18 = vadd.f32 %v2743_v22, %v2723_v35  ;;  %v2388_v58 = vadd.f32 %v2386_v21, %v2366_v30  ;;  %v3418_v59 = vunpack.i.h.bf16 %v4189_v60 }
 0x744   : > { %v2763_v13 = vsel %vm798_vm5, %v3412_v10, %v3413_v9  ;;  %v2764_v34 = vsel %vm798_vm5, %v3413_v9, %v3417_v11 }
 0x745   : > { %v3421_v28 = vpop.permute.xlu1 %3420  ;;  %v4198_v29 = vpop.permute.xlu0 %3425  ;;  %v2767_v40 = vadd.f32 %v2763_v13, %v2744_v42  ;;  %v2768_v41 = vadd.f32 %v2764_v34, %v2745_v18 }
 0x746   : > { %v3423_v12 = vunpack.i.h.bf16 %v3421_v28  ;;  %v3422_v14 = vunpack.i.l.bf16 %v3421_v28  ;;  %v3427_v19 = vunpack.i.l.bf16 %v4198_v29  ;;  %v3428_v60 = vunpack.i.h.bf16 %v4198_v29 }
 0x748   : > { %v2783_v5 = vsel %vm823_vm6, %v3422_v14, %v3423_v12  ;;  %v2784_v20 = vsel %vm823_vm6, %v3423_v12, %v3427_v19 }
 0x749   : > { %v3431_v23 = vpop.permute.xlu1 %3430  ;;  %v4207_v24 = vpop.permute.xlu0 %3435  ;;  %v2787_v8 = vsel %vm3742_vm7, %v2783_v5, 0.0  ;;  %v2788_v33 = vsel %vm3746_vm9, %v2784_v20, 0.0 }
 0x74a   : > { %v3433_v47 = vunpack.i.h.bf16 %v3431_v23  ;;  %v3432_v48 = vunpack.i.l.bf16 %v3431_v23  ;;  %v3437_v31 = vunpack.i.l.bf16 %v4207_v24  ;;  %v2789_v6 = vadd.f32 %v2787_v8, %v2767_v40 }
 0x74b   : > { %v2790_v56 = vadd.f32 %v2788_v33, %v2768_v41 }
 0x74c   : > { %v2808_v38 = vsel %vm846_vm8, %v3432_v48, %v3433_v47  ;;  %v2809_v45 = vsel %vm846_vm8, %v3433_v47, %v3437_v31 }
 0x74d   : > { %v3441_v39 = vpop.permute.xlu1 %3440  ;;  %v3456_v49 = vpop.permute.xlu0 %3455  ;;  %v2812_v50 = vsel %vm3726_vm3, %v2808_v38, 0.0  ;;  %v2813_v54 = vsel %vm3730_vm4, %v2809_v45, 0.0 }
 0x74e   : > { %v3443_v55 = vunpack.i.h.bf16 %v3441_v39  ;;  %v3442_v3 = vunpack.i.l.bf16 %v3441_v39  ;;  %v2814_v1 = vadd.f32 %v2812_v50, %v2789_v6  ;;  %v2815_v0 = vadd.f32 %v2813_v54, %v2790_v56 }
 0x74f   : > { %v3458_v46 = vunpack.i.h.bf16 %v3456_v49  ;;  %v3457_v22 = vunpack.i.l.bf16 %v3456_v49 }
 0x750   : > { %v2834_v62 = vsel %vm869_vm10, %v3443_v55, %v4181_v51  ;;  %v2833_v63 = vsel %vm869_vm10, %v3442_v3, %v3443_v55  ;;  %v3438_v51 = vunpack.i.h.bf16 %v4207_v24 }
 0x751   : > { %v2838_v61 = vsel %vm3746_vm9, %v2834_v62, 0.0  ;;  %v2837_v2 = vsel %vm3742_vm7, %v2833_v63, 0.0  ;;  %v3446_v57 = vpop.permute.xlu1 %3445  ;;  %v3461_v7 = vpop.permute.xlu0 %3460  ;;  %v2881_v18 = vsel %vm915_vm12, %v3458_v46, %v4183_v52 }
 0x752   : > { %v3448_v9 = vunpack.i.h.bf16 %v3446_v57  ;;  %v3447_v28 = vunpack.i.l.bf16 %v3446_v57  ;;  %v3463_v10 = vunpack.i.h.bf16 %v3461_v7  ;;  %v3462_v11 = vunpack.i.l.bf16 %v3461_v7 }
 0x753   : > { %v2839_v12 = vadd.f32 %v2837_v2, %v2814_v1  ;;  %v2840_v14 = vadd.f32 %v2838_v61, %v2815_v0 }
 0x754   : > { %v2856_v15 = vsel %vm892_vm11, %v3448_v9, %v4185_v27  ;;  %v2855_v17 = vsel %vm892_vm11, %v3447_v28, %v3448_v9  ;;  %v2901_v29 = vsel %vm936_vm13, %v3463_v10, %v4187_v53  ;;  %v2900_v37 = vsel %vm936_vm13, %v3462_v11, %v3463_v10 }
 0x755   : > { %v2860_v35 = vsel %vm3730_vm4, %v2856_v15, 0.0  ;;  %v2859_v19 = vsel %vm3726_vm3, %v2855_v17, 0.0  ;;  %v3451_v36 = vpop.permute.xlu1 %3450  ;;  %v3466_v42 = vpop.permute.xlu0 %3465  ;;  %v2880_v27 = vsel %vm915_vm12, %v3457_v22, %v3458_v46  ;;  %v2905_v53 = vsel %vm3746_vm9, %v2901_v29, 0.0 }
 0x756   : > { %v2862_v5 = vadd.f32 %v2860_v35, %v2840_v14  ;;  %v2861_v20 = vadd.f32 %v2859_v19, %v2839_v12  ;;  %v3453_v23 = vunpack.i.h.bf16 %v3451_v36  ;;  %v3452_v24 = vunpack.i.l.bf16 %v3451_v36 }
 0x757   : > { %v3468_v13 = vunpack.i.h.bf16 %v3466_v42  ;;  %v3467_v34 = vunpack.i.l.bf16 %v3466_v42  ;;  %v2904_v16 = vsel %vm3742_vm7, %v2900_v37, 0.0 }
 0x758   : > { %v2884_v47 = vadd.f32 %v2880_v27, %v2861_v20  ;;  %v2885_v48 = vadd.f32 %v2881_v18, %v2862_v5  ;;  %v2407_v30 = vsel %vm798_vm5, %v3418_v59, %v3452_v24  ;;  %v2408_v52 = vsel %vm798_vm5, %v3452_v24, %v3453_v23 }
 0x759   : > { %v2427_v31 = vsel %vm823_vm6, %v3428_v60, %v3467_v34  ;;  %v2428_v32 = vsel %vm823_vm6, %v3467_v34, %v3468_v13  ;;  %v3471_v8 = vpop.permute.xlu1 %3470  ;;  %v3476_v33 = vpop.permute.xlu0 %3475  ;;  %v2411_v40 = vadd.f32 %v2407_v30, %v2388_v58  ;;  %v2412_v41 = vadd.f32 %v2408_v52, %v2389_v4 }
 0x75a   : > { %v2907_v38 = vadd.f32 %v2905_v53, %v2885_v48  ;;  %v2906_v21 = vadd.f32 %v2904_v16, %v2884_v47  ;;  %v2431_v45 = vsel %vm3742_vm7, %v2427_v31, 0.0  ;;  %v2432_v39 = vsel %vm3746_vm9, %v2428_v32, 0.0 }
 0x75b   : > { %v3473_v49 = vunpack.i.h.bf16 %v3471_v8  ;;  %v3472_v50 = vunpack.i.l.bf16 %v3471_v8  ;;  %v2433_v3 = vadd.f32 %v2431_v45, %v2411_v40  ;;  %v3478_v6 = vunpack.i.h.bf16 %v3476_v33  ;;  %v2926_v8 = vld [vmem:[%s3669_s14] sm:$0xff] }
 0x75c   : > { %v3159_v54 = vmul.f32 -1.442695, %v2907_v38  ;;  %v3158_v55 = vmul.f32 -1.442695, %v2906_v21  ;;  %v3477_v62 = vunpack.i.l.bf16 %v3476_v33  ;;  %v2434_v58 = vadd.f32 %v2432_v39, %v2412_v41 }
 0x75d   : > { %v2452_v56 = vsel %vm846_vm8, %v3438_v51, %v3472_v50  ;;  %v2453_v59 = vsel %vm846_vm8, %v3472_v50, %v3473_v49  ;;  %v2476_v63 = vpop.permute.xlu1 %2475  ;;  %v3481_v4 = vpop.permute.xlu0 %3480  ;;  %v2928_v40 = vcombine.high %v2926_v8, %v2926_v8 }
 0x75e   : > { %3526 = vpow2.f32 %v3159_v54  ;;  %v2456_v1 = vsel %vm3726_vm3, %v2452_v56, 0.0  ;;  %v2457_v0 = vsel %vm3730_vm4, %v2453_v59, 0.0  ;;  %v2478_v61 = vsel %vm869_vm10, %v3478_v6, %v2476_v63 }
 0x75f   : > { %3528 = vpow2.f32 %v3158_v55  ;;  %v2458_v2 = vadd.f32 %v2456_v1, %v2433_v3  ;;  %v2477_v57 = vsel %vm869_vm10, %v3477_v62, %v3478_v6  ;;  %v2459_v46 = vadd.f32 %v2457_v0, %v2434_v58 }
 0x760   : > { %v2481_v7 = vsel %vm3742_vm7, %v2477_v57, 0.0  ;;  %v3483_v22 = vunpack.i.h.bf16 %v3481_v4  ;;  %v3482_v9 = vunpack.i.l.bf16 %v3481_v4  ;;  %v2482_v60 = vsel %vm3746_vm9, %v2478_v61, 0.0 }
 0x761   : > { %v2483_v28 = vadd.f32 %v2481_v7, %v2458_v2  ;;  %v2498_v51 = vpop.permute.xlu1 %2497  ;;  %v3486_v10 = vpop.permute.xlu0 %3485  ;;  %v2484_v19 = vadd.f32 %v2482_v60, %v2459_v46 }
 0x762   : > { %v2499_v11 = vsel %vm892_vm11, %v3482_v9, %v3483_v22  ;;  %v2500_v12 = vsel %vm892_vm11, %v3483_v22, %v2498_v51  ;;  %v3488_v14 = vunpack.i.h.bf16 %v3486_v10  ;;  %v3487_v15 = vunpack.i.l.bf16 %v3486_v10 }
 0x763   : > { %v2503_v17 = vsel %vm3726_vm3, %v2499_v11, 0.0  ;;  %v2504_v35 = vsel %vm3730_vm4, %v2500_v12, 0.0 }
 0x764   : > { %v2505_v29 = vadd.f32 %v2503_v17, %v2483_v28  ;;  %v2524_v37 = vsel %vm915_vm12, %v3487_v15, %v3488_v14  ;;  %v2506_v18 = vadd.f32 %v2504_v35, %v2484_v19 }
 0x765   : > { %v2523_v36 = vpop.permute.xlu1 %2522  ;;  %v3491_v42 = vpop.permute.xlu0 %3490 }
 0x766   : > { %v3493_v27 = vunpack.i.h.bf16 %v3491_v42  ;;  %v3492_v5 = vunpack.i.l.bf16 %v3491_v42  ;;  %v2525_v20 = vsel %vm915_vm12, %v3488_v14, %v2523_v36  ;;  %v2528_v23 = vadd.f32 %v2524_v37, %v2505_v29 }
 0x767   : > { %v2529_v26 = vadd.f32 %v2525_v20, %v2506_v18 }
 0x768   : > { %v2544_v24 = vsel %vm936_vm13, %v3492_v5, %v3493_v27 }
 0x769   : > { %v2548_v25 = vsel %vm3742_vm7, %v2544_v24, 0.0  ;;  %v2543_v13 = vpop.permute.xlu1 %2542 }
 0x76a   : > { %v2550_v34 = vadd.f32 %v2548_v25, %v2528_v23  ;;  %v2545_v47 = vsel %vm936_vm13, %v3493_v27, %v2543_v13 }
 0x76b   : > { %v3527_v48 = vpop.eup %3526  ;;  %v2549_v53 = vsel %vm3746_vm9, %v2545_v47, 0.0 }
 0x76c   : > { %v3529_v16 = vpop.eup %3528  ;;  %v2917_v30 = vadd.f32 1.0, %v3527_v48  ;;  %v2551_v52 = vadd.f32 %v2549_v53, %v2529_v26  ;;  %3530 = vtanh.f32 %v2550_v34 }
 0x76d   : > { %v2916_v31 = vadd.f32 1.0, %v3529_v16 }
 0x76e   : > { %3532 = vrcp.f32 %v2917_v30 }
 0x76f   : > { %3534 = vrcp.f32 %v2916_v31 }
 0x770   : > { %3536 = vtanh.f32 %v2551_v52 }
 0x779   : > { %v3531_v43 = vpop.eup %3530 }
 0x77b   : > { %v3533_v32 = vpop.eup %3532 }
 0x77c   : > { %v3535_v33 = vpop.eup %3534 }
 0x77d   : > { %v3537_v38 = vpop.eup %3536  ;;  %v2922_v21 = vmul.f32 %v3535_v33, %v3531_v43 }
 0x77e   : > { %v2923_v41 = vmul.f32 %v3537_v38, %v3533_v32 }
 0x77f   : > { %v2924_v45 = vmul.f32 0.2, %v2922_v21 }
 0x780   : > { %v2925_v44 = vmul.f32 0.2, %v2923_v41 }
 0x781   : > { %v2930_v39 = vadd.f32 %v2926_v8, %v2924_v45 }
 0x782   : > { %v2931_v49 = vadd.f32 %v2928_v40, %v2925_v44 }
 0x784   : > { %v2934_v50 = vcombine.low %v2930_v39, %v2931_v49 }
 0x786   : > { %2936 = vst [vmem:[%s474_s21] sm:$0xff] %v2934_v50 }
 0x787 PF: > { %s23_s25 = sadd.s32 1, %s3550_s25  }
 0x788   : > { %p20_p4 = scmp.ge.s32.totalorder %s23_s25, 4  }
 0x78a   :  { %22 = sbr.rel (!%p20_p4) target bundleno = 1 (0x1), region = 108 }

</bundles_post_ra>
